<compile_context>
chip_gen: v5e
topology: v5e:2x2
jax: 0.10.0
libtpu: 0.0.40
codegen_flags: <defaults>
</compile_context>

<pallas_src>
import functools

import jax
import jax.numpy as jnp
from jax.experimental import pallas as pl
from jax.experimental.pallas import tpu as pltpu


# ----------------------------------------------------------------------------
# Pallas kernel: full multi-layer LSTM over the whole sequence, one invocation.
#   x_ref      : (seq*B3p, H) f32     embedded inputs, flattened over time
#   wih_ref    : (L, H, 4H)   bf16    input->gates weights (pre-transposed)
#   whh_ref    : (L, H, 4H)   bf16    hidden->gates weights (pre-transposed)
#   b_ref      : (L, 1, 4H)   f32     combined bias (b_ih + b_hh)
#   hidden_ref : (L, B3p, H)  f32     final hidden states
#   cell_ref   : (L, B3p, H)  f32     final cell states
#   seqbuf_ref : VMEM (seq*B3p, H) f32  layer-output sequence (feeds next layer)
# PyTorch LSTM gate order is (i, f, g, o).
# ----------------------------------------------------------------------------
def _lstm_kernel(x_ref, wih_ref, whh_ref, b_ref,
                 hidden_ref, cell_ref,
                 seqbuf_ref, *, n_layers, hid_dim, seq_len, b3p):
    H = hid_dim

    for layer in range(n_layers):  # n_layers small & static -> unrolled
        # Full-sequence input projection: one big GEMM per layer (bias folded).
        x_all = (x_ref[...] if layer == 0 else seqbuf_ref[...]).astype(jnp.bfloat16)
        gin = (jnp.dot(x_all, wih_ref[layer],
                       preferred_element_type=jnp.float32)
               + b_ref[layer])                      # (seq*B3p, 4H) f32

        h = jnp.zeros((b3p, H), jnp.float32)
        c = jnp.zeros((b3p, H), jnp.float32)

        for t in range(seq_len):  # static, unrolled timestep loop
            g = gin[t * b3p:(t + 1) * b3p, :] + jnp.dot(
                h.astype(jnp.bfloat16), whh_ref[layer],
                preferred_element_type=jnp.float32)   # (B3p, 4H) f32

            i_g = jax.nn.sigmoid(g[:, 0 * H:1 * H])
            f_g = jax.nn.sigmoid(g[:, 1 * H:2 * H])
            g_g = jnp.tanh(g[:, 2 * H:3 * H])
            o_g = jax.nn.sigmoid(g[:, 3 * H:4 * H])

            c = f_g * c + i_g * g_g
            h = o_g * jnp.tanh(c)

            # Store this layer's output sequence for the next layer's big GEMM.
            # (Inter-layer dropout = identity at eval.)
            if layer + 1 < n_layers:
                seqbuf_ref[t * b3p:(t + 1) * b3p, :] = h

        hidden_ref[layer] = h
        cell_ref[layer] = c


def lstm_pallas(embedded, wih, whh, b):
    """embedded: (seq, B3, H) f32.  Returns (hidden, cell), each (L, B3, H)."""
    seq_len, b3, hid = embedded.shape
    n_layers = wih.shape[0]

    # Pad batch axis to the f32 sublane multiple (8) so no row-masked vregs.
    b3p = ((b3 + 7) // 8) * 8
    if b3p != b3:
        embedded = jnp.pad(embedded, ((0, 0), (0, b3p - b3), (0, 0)))

    x2d = embedded.reshape(seq_len * b3p, hid).astype(jnp.float32)
    wih_b = wih.astype(jnp.bfloat16)
    whh_b = whh.astype(jnp.bfloat16)
    b_f32 = b.astype(jnp.float32)

    kernel = functools.partial(_lstm_kernel, n_layers=n_layers, hid_dim=hid,
                               seq_len=seq_len, b3p=b3p)

    hidden, cell = pl.pallas_call(
        kernel,
        out_shape=(
            jax.ShapeDtypeStruct((n_layers, b3p, hid), jnp.float32),
            jax.ShapeDtypeStruct((n_layers, b3p, hid), jnp.float32),
        ),
        grid_spec=pltpu.PrefetchScalarGridSpec(
            num_scalar_prefetch=0,
            grid=(1,),
            in_specs=[
                pl.BlockSpec((seq_len * b3p, hid), lambda i: (0, 0)),
                pl.BlockSpec((n_layers, hid, 4 * hid), lambda i: (0, 0, 0)),
                pl.BlockSpec((n_layers, hid, 4 * hid), lambda i: (0, 0, 0)),
                pl.BlockSpec((n_layers, 1, 4 * hid), lambda i: (0, 0, 0)),
            ],
            out_specs=[
                pl.BlockSpec((n_layers, b3p, hid), lambda i: (0, 0, 0)),
                pl.BlockSpec((n_layers, b3p, hid), lambda i: (0, 0, 0)),
            ],
            scratch_shapes=[
                pltpu.VMEM((seq_len * b3p, hid), jnp.float32),
            ],
        ),
        compiler_params=pltpu.CompilerParams(
            dimension_semantics=("arbitrary",)),
    )(x2d, wih_b, whh_b, b_f32)

    return hidden[:, :b3, :], cell[:, :b3, :]


# ----------------------------------------------------------------------------
# CondRNNEncoder forward (glue: embedding gathers, concat; hot path: Pallas LSTM)
# ----------------------------------------------------------------------------
def cond_rnn_encoder_forward(params, src_x, src_xprime, src_yprime):
    # Embedding lookups (gathers) -- plain JAX glue.
    # TODO(synk): embedding gather + concat could be fused into the kernel via
    # scalar prefetch; kept as XLA glue here for robustness at these tiny sizes.
    wordx_emb = params["word_emb"][src_x]            # (seq, B, H)
    wordxprime_emb = params["word_emb"][src_xprime]  # (seq, B, H)
    tok_emb = params["tok_emb"][src_yprime]          # (seq, B, H)

    # TODO(synk): nn.Dropout is stochastic in train mode; here we implement
    # inference (eval) mode where dropout is identity.
    embedded = jnp.concatenate(
        (wordx_emb, wordxprime_emb, tok_emb), axis=1)  # (seq, 3B, H)

    hidden, cell = lstm_pallas(
        embedded, params["wih"], params["whh"], params["b"])
    # outputs[-1] (top-layer output at the final timestep) == hidden[-1].
    return hidden, cell, hidden[-1]


# Pure-JAX reference (for in-script correctness check).  Uses the same bf16
# matmul operands / f32 accumulation as the kernel so tolerances stay tight.
def _lstm_ref(embedded, wih, whh, b):
    seq_len, b3, H = embedded.shape
    n_layers = wih.shape[0]
    wih_b = wih.astype(jnp.bfloat16)
    whh_b = whh.astype(jnp.bfloat16)
    h0 = jnp.zeros((n_layers, b3, H), jnp.float32)
    c0 = jnp.zeros((n_layers, b3, H), jnp.float32)

    def step(carry, x):
        h, c = carry
        hs, cs = [], []
        inp = x
        for l in range(n_layers):
            gates = (jnp.dot(inp.astype(jnp.bfloat16), wih_b[l],
                             preferred_element_type=jnp.float32)
                     + jnp.dot(h[l].astype(jnp.bfloat16), whh_b[l],
                               preferred_element_type=jnp.float32)
                     + b[l])
            i = jax.nn.sigmoid(gates[:, :H])
            f = jax.nn.sigmoid(gates[:, H:2 * H])
            g = jnp.tanh(gates[:, 2 * H:3 * H])
            o = jax.nn.sigmoid(gates[:, 3 * H:])
            cn = f * c[l] + i * g
            hn = o * jnp.tanh(cn)
            hs.append(hn)
            cs.append(cn)
            inp = hn
        return (jnp.stack(hs), jnp.stack(cs)), inp

    (h, c), outs = jax.lax.scan(step, (h0, c0), embedded)
    return outs, h, c


def init_params(key, comment_input_dim, code_input_dim, hid_dim, n_layers):
    ks = jax.random.split(key, 5)
    k = 1.0 / jnp.sqrt(hid_dim)
    word_emb = jax.random.normal(ks[0], (comment_input_dim, hid_dim), jnp.float32)
    tok_emb = jax.random.normal(ks[1], (code_input_dim, hid_dim), jnp.float32)
    # LSTM weights stored pre-transposed: (L, H, 4H); bias = b_ih + b_hh: (L, 1, 4H)
    wih = jax.random.uniform(ks[2], (n_layers, hid_dim, 4 * hid_dim),
                             jnp.float32, -k, k)
    whh = jax.random.uniform(ks[3], (n_layers, hid_dim, 4 * hid_dim),
                             jnp.float32, -k, k)
    b = jax.random.uniform(ks[4], (n_layers, 1, 4 * hid_dim),
                           jnp.float32, -2 * k, 2 * k)
    return dict(word_emb=word_emb, tok_emb=tok_emb, wih=wih, whh=whh, b=b)


if __name__ == "__main__":
    # Module hyperparameters (small, deterministic).
    comment_input_dim = 50
    code_input_dim = 40
    emb_dim = 16        # stored but unused in the PyTorch forward pass
    hid_dim = 32
    n_layers = 2
    seq_len = 8
    batch = 2

    key = jax.random.PRNGKey(0)
    kp, kx, kxp, kyp = jax.random.split(key, 4)
    params = init_params(kp, comment_input_dim, code_input_dim, hid_dim, n_layers)

    src_x = jax.random.randint(kx, (seq_len, batch), 0, comment_input_dim)
    src_xprime = jax.random.randint(kxp, (seq_len, batch), 0, comment_input_dim)
    src_yprime = jax.random.randint(kyp, (seq_len, batch), 0, code_input_dim)

    hidden, cell, last_out = jax.block_until_ready(
        cond_rnn_encoder_forward(params, src_x, src_xprime, src_yprime))

    # Silent correctness check against a pure-JAX reference.
    embedded = jnp.concatenate(
        (params["word_emb"][src_x],
         params["word_emb"][src_xprime],
         params["tok_emb"][src_yprime]), axis=1)
    outs_ref, h_ref, c_ref = _lstm_ref(
        embedded, params["wih"], params["whh"], params["b"])
    assert hidden.shape == (n_layers, 3 * batch, hid_dim)
    assert cell.shape == (n_layers, 3 * batch, hid_dim)
    assert last_out.shape == (3 * batch, hid_dim)
    assert jnp.allclose(hidden, h_ref, atol=5e-3, rtol=5e-3)
    assert jnp.allclose(cell, c_ref, atol=5e-3, rtol=5e-3)
    assert jnp.allclose(last_out, outs_ref[-1], atol=5e-3, rtol=5e-3)

    print("KERNEL_OK")
</pallas_src>

<mosaic_0001>
module attributes {stable_mosaic.version = 11 : i64} {
  func.func @_lstm_kernel(%arg0: i32, %arg1: memref<64x32xf32, #tpu.memory_space<vmem>>, %arg2: memref<2x32x128xbf16, #tpu.memory_space<vmem>>, %arg3: memref<2x32x128xbf16, #tpu.memory_space<vmem>>, %arg4: memref<2x1x128xf32, #tpu.memory_space<vmem>>, %arg5: memref<2x8x32xf32, #tpu.memory_space<vmem>>, %arg6: memref<2x8x32xf32, #tpu.memory_space<vmem>>, %arg7: memref<64x32xf32, #tpu.memory_space<vmem>>) attributes {dimension_semantics = [#tpu.dimension_semantics<arbitrary>], iteration_bounds = array<i64: 1>, scalar_prefetch = 0 : i64, scratch_operands = 1 : i64, tpu.core_type = #tpu.core_type<tc>, window_params = [{pipeline_mode = #tpu.pipeline_mode<synchronous>, transform_indices = @transform_0, window_bounds = array<i64: 64, 32>}, {pipeline_mode = #tpu.pipeline_mode<synchronous>, transform_indices = @transform_1, window_bounds = array<i64: 2, 32, 128>}, {pipeline_mode = #tpu.pipeline_mode<synchronous>, transform_indices = @transform_2, window_bounds = array<i64: 2, 32, 128>}, {pipeline_mode = #tpu.pipeline_mode<synchronous>, transform_indices = @transform_3, window_bounds = array<i64: 2, 1, 128>}, {pipeline_mode = #tpu.pipeline_mode<synchronous>, transform_indices = @transform_4, window_bounds = array<i64: 2, 8, 32>}, {pipeline_mode = #tpu.pipeline_mode<synchronous>, transform_indices = @transform_5, window_bounds = array<i64: 2, 8, 32>}]} {
    %c0 = arith.constant 0 : index
    %c0_0 = arith.constant 0 : index
    %0 = vector.load %arg1[%c0, %c0_0] : memref<64x32xf32, #tpu.memory_space<vmem>>, vector<64x32xf32>
    %1 = arith.truncf %0 : vector<64x32xf32> to vector<64x32xbf16>
    %c0_1 = arith.constant 0 : index
    %c0_2 = arith.constant 0 : index
    %c0_3 = arith.constant 0 : index
    %2 = vector.load %arg2[%c0_1, %c0_2, %c0_3] : memref<2x32x128xbf16, #tpu.memory_space<vmem>>, vector<1x32x128xbf16>
    %3 = vector.shape_cast %2 : vector<1x32x128xbf16> to vector<32x128xbf16>
    %cst = arith.constant dense<0.000000e+00> : vector<64x128xf32>
    %4 = tpu.matmul %1, %3, %cst {dimension_numbers = #tpu.dot_dimension_numbers<[1], [0], [0], [1], [0, 0, 1, 1], [], []>} : vector<64x32xbf16>, vector<32x128xbf16>, vector<64x128xf32> -> vector<64x128xf32>
    %c0_4 = arith.constant 0 : index
    %c0_5 = arith.constant 0 : index
    %c0_6 = arith.constant 0 : index
    %5 = vector.load %arg4[%c0_4, %c0_5, %c0_6] : memref<2x1x128xf32, #tpu.memory_space<vmem>>, vector<1x1x128xf32>
    %6 = vector.shape_cast %5 : vector<1x1x128xf32> to vector<1x128xf32>
    %7 = vector.broadcast %6 : vector<1x128xf32> to vector<64x128xf32>
    %8 = arith.addf %4, %7 : vector<64x128xf32>
    %cst_7 = arith.constant 0.000000e+00 : f32
    %9 = vector.broadcast %cst_7 : f32 to vector<8x32xf32>
    %cst_8 = arith.constant 0.000000e+00 : f32
    %10 = vector.broadcast %cst_8 : f32 to vector<8x32xf32>
    %11 = vector.extract_strided_slice %8 {offsets = [0, 0], sizes = [8, 128], strides = [1, 1]} : vector<64x128xf32> to vector<8x128xf32>
    %12 = arith.truncf %9 : vector<8x32xf32> to vector<8x32xbf16>
    %c0_9 = arith.constant 0 : index
    %c0_10 = arith.constant 0 : index
    %c0_11 = arith.constant 0 : index
    %13 = vector.load %arg3[%c0_9, %c0_10, %c0_11] : memref<2x32x128xbf16, #tpu.memory_space<vmem>>, vector<1x32x128xbf16>
    %14 = vector.shape_cast %13 : vector<1x32x128xbf16> to vector<32x128xbf16>
    %cst_12 = arith.constant dense<0.000000e+00> : vector<8x128xf32>
    %15 = tpu.matmul %12, %14, %cst_12 {dimension_numbers = #tpu.dot_dimension_numbers<[1], [0], [0], [1], [0, 0, 1, 1], [], []>} : vector<8x32xbf16>, vector<32x128xbf16>, vector<8x128xf32> -> vector<8x128xf32>
    %16 = arith.addf %11, %15 : vector<8x128xf32>
    %17 = vector.extract_strided_slice %16 {offsets = [0, 0], sizes = [8, 32], strides = [1, 1]} : vector<8x128xf32> to vector<8x32xf32>
    %18 = arith.negf %17 : vector<8x32xf32>
    %19 = math.exp %18 : vector<8x32xf32>
    %cst_13 = arith.constant 1.000000e+00 : f32
    %20 = vector.broadcast %cst_13 : f32 to vector<8x32xf32>
    %21 = arith.addf %20, %19 : vector<8x32xf32>
    %22 = arith.divf %20, %21 : vector<8x32xf32>
    %23 = vector.extract_strided_slice %16 {offsets = [0, 32], sizes = [8, 32], strides = [1, 1]} : vector<8x128xf32> to vector<8x32xf32>
    %24 = arith.negf %23 : vector<8x32xf32>
    %25 = math.exp %24 : vector<8x32xf32>
    %cst_14 = arith.constant 1.000000e+00 : f32
    %26 = vector.broadcast %cst_14 : f32 to vector<8x32xf32>
    %27 = arith.addf %26, %25 : vector<8x32xf32>
    %28 = arith.divf %26, %27 : vector<8x32xf32>
    %29 = vector.extract_strided_slice %16 {offsets = [0, 64], sizes = [8, 32], strides = [1, 1]} : vector<8x128xf32> to vector<8x32xf32>
    %30 = math.tanh %29 : vector<8x32xf32>
    %31 = vector.extract_strided_slice %16 {offsets = [0, 96], sizes = [8, 32], strides = [1, 1]} : vector<8x128xf32> to vector<8x32xf32>
    %32 = arith.negf %31 : vector<8x32xf32>
    %33 = math.exp %32 : vector<8x32xf32>
    %cst_15 = arith.constant 1.000000e+00 : f32
    %34 = vector.broadcast %cst_15 : f32 to vector<8x32xf32>
    %35 = arith.addf %34, %33 : vector<8x32xf32>
    %36 = arith.divf %34, %35 : vector<8x32xf32>
    %37 = arith.mulf %28, %10 : vector<8x32xf32>
    %38 = arith.mulf %22, %30 : vector<8x32xf32>
    %39 = arith.addf %37, %38 : vector<8x32xf32>
    %40 = math.tanh %39 : vector<8x32xf32>
    %41 = arith.mulf %36, %40 : vector<8x32xf32>
    %c0_16 = arith.constant 0 : index
    %c0_17 = arith.constant 0 : index
    %42 = vector.load %arg7[%c0_16, %c0_17] : memref<64x32xf32, #tpu.memory_space<vmem>>, vector<8x32xf32>
    tpu.vector_store %arg7[%c0_16, %c0_17], %41 {strides = array<i32>} : memref<64x32xf32, #tpu.memory_space<vmem>>, vector<8x32xf32>,
    %43 = vector.extract_strided_slice %8 {offsets = [8, 0], sizes = [8, 128], strides = [1, 1]} : vector<64x128xf32> to vector<8x128xf32>
    %44 = arith.truncf %41 : vector<8x32xf32> to vector<8x32xbf16>
    %c0_18 = arith.constant 0 : index
    %c0_19 = arith.constant 0 : index
    %c0_20 = arith.constant 0 : index
    %45 = vector.load %arg3[%c0_18, %c0_19, %c0_20] : memref<2x32x128xbf16, #tpu.memory_space<vmem>>, vector<1x32x128xbf16>
    %46 = vector.shape_cast %45 : vector<1x32x128xbf16> to vector<32x128xbf16>
    %cst_21 = arith.constant dense<0.000000e+00> : vector<8x128xf32>
    %47 = tpu.matmul %44, %46, %cst_21 {dimension_numbers = #tpu.dot_dimension_numbers<[1], [0], [0], [1], [0, 0, 1, 1], [], []>} : vector<8x32xbf16>, vector<32x128xbf16>, vector<8x128xf32> -> vector<8x128xf32>
    %48 = arith.addf %43, %47 : vector<8x128xf32>
    %49 = vector.extract_strided_slice %48 {offsets = [0, 0], sizes = [8, 32], strides = [1, 1]} : vector<8x128xf32> to vector<8x32xf32>
    %50 = arith.negf %49 : vector<8x32xf32>
    %51 = math.exp %50 : vector<8x32xf32>
    %cst_22 = arith.constant 1.000000e+00 : f32
    %52 = vector.broadcast %cst_22 : f32 to vector<8x32xf32>
    %53 = arith.addf %52, %51 : vector<8x32xf32>
    %54 = arith.divf %52, %53 : vector<8x32xf32>
    %55 = vector.extract_strided_slice %48 {offsets = [0, 32], sizes = [8, 32], strides = [1, 1]} : vector<8x128xf32> to vector<8x32xf32>
    %56 = arith.negf %55 : vector<8x32xf32>
    %57 = math.exp %56 : vector<8x32xf32>
    %cst_23 = arith.constant 1.000000e+00 : f32
    %58 = vector.broadcast %cst_23 : f32 to vector<8x32xf32>
    %59 = arith.addf %58, %57 : vector<8x32xf32>
    %60 = arith.divf %58, %59 : vector<8x32xf32>
    %61 = vector.extract_strided_slice %48 {offsets = [0, 64], sizes = [8, 32], strides = [1, 1]} : vector<8x128xf32> to vector<8x32xf32>
    %62 = math.tanh %61 : vector<8x32xf32>
    %63 = vector.extract_strided_slice %48 {offsets = [0, 96], sizes = [8, 32], strides = [1, 1]} : vector<8x128xf32> to vector<8x32xf32>
    %64 = arith.negf %63 : vector<8x32xf32>
    %65 = math.exp %64 : vector<8x32xf32>
    %cst_24 = arith.constant 1.000000e+00 : f32
    %66 = vector.broadcast %cst_24 : f32 to vector<8x32xf32>
    %67 = arith.addf %66, %65 : vector<8x32xf32>
    %68 = arith.divf %66, %67 : vector<8x32xf32>
    %69 = arith.mulf %60, %39 : vector<8x32xf32>
    %70 = arith.mulf %54, %62 : vector<8x32xf32>
    %71 = arith.addf %69, %70 : vector<8x32xf32>
    %72 = math.tanh %71 : vector<8x32xf32>
    %73 = arith.mulf %68, %72 : vector<8x32xf32>
    %c8 = arith.constant 8 : index
    %c0_25 = arith.constant 0 : index
    %74 = vector.load %arg7[%c8, %c0_25] : memref<64x32xf32, #tpu.memory_space<vmem>>, vector<8x32xf32>
    tpu.vector_store %arg7[%c8, %c0_25], %73 {strides = array<i32>} : memref<64x32xf32, #tpu.memory_space<vmem>>, vector<8x32xf32>,
    %75 = vector.extract_strided_slice %8 {offsets = [16, 0], sizes = [8, 128], strides = [1, 1]} : vector<64x128xf32> to vector<8x128xf32>
    %76 = arith.truncf %73 : vector<8x32xf32> to vector<8x32xbf16>
    %c0_26 = arith.constant 0 : index
    %c0_27 = arith.constant 0 : index
    %c0_28 = arith.constant 0 : index
    %77 = vector.load %arg3[%c0_26, %c0_27, %c0_28] : memref<2x32x128xbf16, #tpu.memory_space<vmem>>, vector<1x32x128xbf16>
    %78 = vector.shape_cast %77 : vector<1x32x128xbf16> to vector<32x128xbf16>
    %cst_29 = arith.constant dense<0.000000e+00> : vector<8x128xf32>
    %79 = tpu.matmul %76, %78, %cst_29 {dimension_numbers = #tpu.dot_dimension_numbers<[1], [0], [0], [1], [0, 0, 1, 1], [], []>} : vector<8x32xbf16>, vector<32x128xbf16>, vector<8x128xf32> -> vector<8x128xf32>
    %80 = arith.addf %75, %79 : vector<8x128xf32>
    %81 = vector.extract_strided_slice %80 {offsets = [0, 0], sizes = [8, 32], strides = [1, 1]} : vector<8x128xf32> to vector<8x32xf32>
    %82 = arith.negf %81 : vector<8x32xf32>
    %83 = math.exp %82 : vector<8x32xf32>
    %cst_30 = arith.constant 1.000000e+00 : f32
    %84 = vector.broadcast %cst_30 : f32 to vector<8x32xf32>
    %85 = arith.addf %84, %83 : vector<8x32xf32>
    %86 = arith.divf %84, %85 : vector<8x32xf32>
    %87 = vector.extract_strided_slice %80 {offsets = [0, 32], sizes = [8, 32], strides = [1, 1]} : vector<8x128xf32> to vector<8x32xf32>
    %88 = arith.negf %87 : vector<8x32xf32>
    %89 = math.exp %88 : vector<8x32xf32>
    %cst_31 = arith.constant 1.000000e+00 : f32
    %90 = vector.broadcast %cst_31 : f32 to vector<8x32xf32>
    %91 = arith.addf %90, %89 : vector<8x32xf32>
    %92 = arith.divf %90, %91 : vector<8x32xf32>
    %93 = vector.extract_strided_slice %80 {offsets = [0, 64], sizes = [8, 32], strides = [1, 1]} : vector<8x128xf32> to vector<8x32xf32>
    %94 = math.tanh %93 : vector<8x32xf32>
    %95 = vector.extract_strided_slice %80 {offsets = [0, 96], sizes = [8, 32], strides = [1, 1]} : vector<8x128xf32> to vector<8x32xf32>
    %96 = arith.negf %95 : vector<8x32xf32>
    %97 = math.exp %96 : vector<8x32xf32>
    %cst_32 = arith.constant 1.000000e+00 : f32
    %98 = vector.broadcast %cst_32 : f32 to vector<8x32xf32>
    %99 = arith.addf %98, %97 : vector<8x32xf32>
    %100 = arith.divf %98, %99 : vector<8x32xf32>
    %101 = arith.mulf %92, %71 : vector<8x32xf32>
    %102 = arith.mulf %86, %94 : vector<8x32xf32>
    %103 = arith.addf %101, %102 : vector<8x32xf32>
    %104 = math.tanh %103 : vector<8x32xf32>
    %105 = arith.mulf %100, %104 : vector<8x32xf32>
    %c16 = arith.constant 16 : index
    %c0_33 = arith.constant 0 : index
    %106 = vector.load %arg7[%c16, %c0_33] : memref<64x32xf32, #tpu.memory_space<vmem>>, vector<8x32xf32>
    tpu.vector_store %arg7[%c16, %c0_33], %105 {strides = array<i32>} : memref<64x32xf32, #tpu.memory_space<vmem>>, vector<8x32xf32>,
    %107 = vector.extract_strided_slice %8 {offsets = [24, 0], sizes = [8, 128], strides = [1, 1]} : vector<64x128xf32> to vector<8x128xf32>
    %108 = arith.truncf %105 : vector<8x32xf32> to vector<8x32xbf16>
    %c0_34 = arith.constant 0 : index
    %c0_35 = arith.constant 0 : index
    %c0_36 = arith.constant 0 : index
    %109 = vector.load %arg3[%c0_34, %c0_35, %c0_36] : memref<2x32x128xbf16, #tpu.memory_space<vmem>>, vector<1x32x128xbf16>
    %110 = vector.shape_cast %109 : vector<1x32x128xbf16> to vector<32x128xbf16>
    %cst_37 = arith.constant dense<0.000000e+00> : vector<8x128xf32>
    %111 = tpu.matmul %108, %110, %cst_37 {dimension_numbers = #tpu.dot_dimension_numbers<[1], [0], [0], [1], [0, 0, 1, 1], [], []>} : vector<8x32xbf16>, vector<32x128xbf16>, vector<8x128xf32> -> vector<8x128xf32>
    %112 = arith.addf %107, %111 : vector<8x128xf32>
    %113 = vector.extract_strided_slice %112 {offsets = [0, 0], sizes = [8, 32], strides = [1, 1]} : vector<8x128xf32> to vector<8x32xf32>
    %114 = arith.negf %113 : vector<8x32xf32>
    %115 = math.exp %114 : vector<8x32xf32>
    %cst_38 = arith.constant 1.000000e+00 : f32
    %116 = vector.broadcast %cst_38 : f32 to vector<8x32xf32>
    %117 = arith.addf %116, %115 : vector<8x32xf32>
    %118 = arith.divf %116, %117 : vector<8x32xf32>
    %119 = vector.extract_strided_slice %112 {offsets = [0, 32], sizes = [8, 32], strides = [1, 1]} : vector<8x128xf32> to vector<8x32xf32>
    %120 = arith.negf %119 : vector<8x32xf32>
    %121 = math.exp %120 : vector<8x32xf32>
    %cst_39 = arith.constant 1.000000e+00 : f32
    %122 = vector.broadcast %cst_39 : f32 to vector<8x32xf32>
    %123 = arith.addf %122, %121 : vector<8x32xf32>
    %124 = arith.divf %122, %123 : vector<8x32xf32>
    %125 = vector.extract_strided_slice %112 {offsets = [0, 64], sizes = [8, 32], strides = [1, 1]} : vector<8x128xf32> to vector<8x32xf32>
    %126 = math.tanh %125 : vector<8x32xf32>
    %127 = vector.extract_strided_slice %112 {offsets = [0, 96], sizes = [8, 32], strides = [1, 1]} : vector<8x128xf32> to vector<8x32xf32>
    %128 = arith.negf %127 : vector<8x32xf32>
    %129 = math.exp %128 : vector<8x32xf32>
    %cst_40 = arith.constant 1.000000e+00 : f32
    %130 = vector.broadcast %cst_40 : f32 to vector<8x32xf32>
    %131 = arith.addf %130, %129 : vector<8x32xf32>
    %132 = arith.divf %130, %131 : vector<8x32xf32>
    %133 = arith.mulf %124, %103 : vector<8x32xf32>
    %134 = arith.mulf %118, %126 : vector<8x32xf32>
    %135 = arith.addf %133, %134 : vector<8x32xf32>
    %136 = math.tanh %135 : vector<8x32xf32>
    %137 = arith.mulf %132, %136 : vector<8x32xf32>
    %c24 = arith.constant 24 : index
    %c0_41 = arith.constant 0 : index
    %138 = vector.load %arg7[%c24, %c0_41] : memref<64x32xf32, #tpu.memory_space<vmem>>, vector<8x32xf32>
    tpu.vector_store %arg7[%c24, %c0_41], %137 {strides = array<i32>} : memref<64x32xf32, #tpu.memory_space<vmem>>, vector<8x32xf32>,
    %139 = vector.extract_strided_slice %8 {offsets = [32, 0], sizes = [8, 128], strides = [1, 1]} : vector<64x128xf32> to vector<8x128xf32>
    %140 = arith.truncf %137 : vector<8x32xf32> to vector<8x32xbf16>
    %c0_42 = arith.constant 0 : index
    %c0_43 = arith.constant 0 : index
    %c0_44 = arith.constant 0 : index
    %141 = vector.load %arg3[%c0_42, %c0_43, %c0_44] : memref<2x32x128xbf16, #tpu.memory_space<vmem>>, vector<1x32x128xbf16>
    %142 = vector.shape_cast %141 : vector<1x32x128xbf16> to vector<32x128xbf16>
    %cst_45 = arith.constant dense<0.000000e+00> : vector<8x128xf32>
    %143 = tpu.matmul %140, %142, %cst_45 {dimension_numbers = #tpu.dot_dimension_numbers<[1], [0], [0], [1], [0, 0, 1, 1], [], []>} : vector<8x32xbf16>, vector<32x128xbf16>, vector<8x128xf32> -> vector<8x128xf32>
    %144 = arith.addf %139, %143 : vector<8x128xf32>
    %145 = vector.extract_strided_slice %144 {offsets = [0, 0], sizes = [8, 32], strides = [1, 1]} : vector<8x128xf32> to vector<8x32xf32>
    %146 = arith.negf %145 : vector<8x32xf32>
    %147 = math.exp %146 : vector<8x32xf32>
    %cst_46 = arith.constant 1.000000e+00 : f32
    %148 = vector.broadcast %cst_46 : f32 to vector<8x32xf32>
    %149 = arith.addf %148, %147 : vector<8x32xf32>
    %150 = arith.divf %148, %149 : vector<8x32xf32>
    %151 = vector.extract_strided_slice %144 {offsets = [0, 32], sizes = [8, 32], strides = [1, 1]} : vector<8x128xf32> to vector<8x32xf32>
    %152 = arith.negf %151 : vector<8x32xf32>
    %153 = math.exp %152 : vector<8x32xf32>
    %cst_47 = arith.constant 1.000000e+00 : f32
    %154 = vector.broadcast %cst_47 : f32 to vector<8x32xf32>
    %155 = arith.addf %154, %153 : vector<8x32xf32>
    %156 = arith.divf %154, %155 : vector<8x32xf32>
    %157 = vector.extract_strided_slice %144 {offsets = [0, 64], sizes = [8, 32], strides = [1, 1]} : vector<8x128xf32> to vector<8x32xf32>
    %158 = math.tanh %157 : vector<8x32xf32>
    %159 = vector.extract_strided_slice %144 {offsets = [0, 96], sizes = [8, 32], strides = [1, 1]} : vector<8x128xf32> to vector<8x32xf32>
    %160 = arith.negf %159 : vector<8x32xf32>
    %161 = math.exp %160 : vector<8x32xf32>
    %cst_48 = arith.constant 1.000000e+00 : f32
    %162 = vector.broadcast %cst_48 : f32 to vector<8x32xf32>
    %163 = arith.addf %162, %161 : vector<8x32xf32>
    %164 = arith.divf %162, %163 : vector<8x32xf32>
    %165 = arith.mulf %156, %135 : vector<8x32xf32>
    %166 = arith.mulf %150, %158 : vector<8x32xf32>
    %167 = arith.addf %165, %166 : vector<8x32xf32>
    %168 = math.tanh %167 : vector<8x32xf32>
    %169 = arith.mulf %164, %168 : vector<8x32xf32>
    %c32 = arith.constant 32 : index
    %c0_49 = arith.constant 0 : index
    %170 = vector.load %arg7[%c32, %c0_49] : memref<64x32xf32, #tpu.memory_space<vmem>>, vector<8x32xf32>
    tpu.vector_store %arg7[%c32, %c0_49], %169 {strides = array<i32>} : memref<64x32xf32, #tpu.memory_space<vmem>>, vector<8x32xf32>,
    %171 = vector.extract_strided_slice %8 {offsets = [40, 0], sizes = [8, 128], strides = [1, 1]} : vector<64x128xf32> to vector<8x128xf32>
    %172 = arith.truncf %169 : vector<8x32xf32> to vector<8x32xbf16>
    %c0_50 = arith.constant 0 : index
    %c0_51 = arith.constant 0 : index
    %c0_52 = arith.constant 0 : index
    %173 = vector.load %arg3[%c0_50, %c0_51, %c0_52] : memref<2x32x128xbf16, #tpu.memory_space<vmem>>, vector<1x32x128xbf16>
    %174 = vector.shape_cast %173 : vector<1x32x128xbf16> to vector<32x128xbf16>
    %cst_53 = arith.constant dense<0.000000e+00> : vector<8x128xf32>
    %175 = tpu.matmul %172, %174, %cst_53 {dimension_numbers = #tpu.dot_dimension_numbers<[1], [0], [0], [1], [0, 0, 1, 1], [], []>} : vector<8x32xbf16>, vector<32x128xbf16>, vector<8x128xf32> -> vector<8x128xf32>
    %176 = arith.addf %171, %175 : vector<8x128xf32>
    %177 = vector.extract_strided_slice %176 {offsets = [0, 0], sizes = [8, 32], strides = [1, 1]} : vector<8x128xf32> to vector<8x32xf32>
    %178 = arith.negf %177 : vector<8x32xf32>
    %179 = math.exp %178 : vector<8x32xf32>
    %cst_54 = arith.constant 1.000000e+00 : f32
    %180 = vector.broadcast %cst_54 : f32 to vector<8x32xf32>
    %181 = arith.addf %180, %179 : vector<8x32xf32>
    %182 = arith.divf %180, %181 : vector<8x32xf32>
    %183 = vector.extract_strided_slice %176 {offsets = [0, 32], sizes = [8, 32], strides = [1, 1]} : vector<8x128xf32> to vector<8x32xf32>
    %184 = arith.negf %183 : vector<8x32xf32>
    %185 = math.exp %184 : vector<8x32xf32>
    %cst_55 = arith.constant 1.000000e+00 : f32
    %186 = vector.broadcast %cst_55 : f32 to vector<8x32xf32>
    %187 = arith.addf %186, %185 : vector<8x32xf32>
    %188 = arith.divf %186, %187 : vector<8x32xf32>
    %189 = vector.extract_strided_slice %176 {offsets = [0, 64], sizes = [8, 32], strides = [1, 1]} : vector<8x128xf32> to vector<8x32xf32>
    %190 = math.tanh %189 : vector<8x32xf32>
    %191 = vector.extract_strided_slice %176 {offsets = [0, 96], sizes = [8, 32], strides = [1, 1]} : vector<8x128xf32> to vector<8x32xf32>
    %192 = arith.negf %191 : vector<8x32xf32>
    %193 = math.exp %192 : vector<8x32xf32>
    %cst_56 = arith.constant 1.000000e+00 : f32
    %194 = vector.broadcast %cst_56 : f32 to vector<8x32xf32>
    %195 = arith.addf %194, %193 : vector<8x32xf32>
    %196 = arith.divf %194, %195 : vector<8x32xf32>
    %197 = arith.mulf %188, %167 : vector<8x32xf32>
    %198 = arith.mulf %182, %190 : vector<8x32xf32>
    %199 = arith.addf %197, %198 : vector<8x32xf32>
    %200 = math.tanh %199 : vector<8x32xf32>
    %201 = arith.mulf %196, %200 : vector<8x32xf32>
    %c40 = arith.constant 40 : index
    %c0_57 = arith.constant 0 : index
    %202 = vector.load %arg7[%c40, %c0_57] : memref<64x32xf32, #tpu.memory_space<vmem>>, vector<8x32xf32>
    tpu.vector_store %arg7[%c40, %c0_57], %201 {strides = array<i32>} : memref<64x32xf32, #tpu.memory_space<vmem>>, vector<8x32xf32>,
    %203 = vector.extract_strided_slice %8 {offsets = [48, 0], sizes = [8, 128], strides = [1, 1]} : vector<64x128xf32> to vector<8x128xf32>
    %204 = arith.truncf %201 : vector<8x32xf32> to vector<8x32xbf16>
    %c0_58 = arith.constant 0 : index
    %c0_59 = arith.constant 0 : index
    %c0_60 = arith.constant 0 : index
    %205 = vector.load %arg3[%c0_58, %c0_59, %c0_60] : memref<2x32x128xbf16, #tpu.memory_space<vmem>>, vector<1x32x128xbf16>
    %206 = vector.shape_cast %205 : vector<1x32x128xbf16> to vector<32x128xbf16>
    %cst_61 = arith.constant dense<0.000000e+00> : vector<8x128xf32>
    %207 = tpu.matmul %204, %206, %cst_61 {dimension_numbers = #tpu.dot_dimension_numbers<[1], [0], [0], [1], [0, 0, 1, 1], [], []>} : vector<8x32xbf16>, vector<32x128xbf16>, vector<8x128xf32> -> vector<8x128xf32>
    %208 = arith.addf %203, %207 : vector<8x128xf32>
    %209 = vector.extract_strided_slice %208 {offsets = [0, 0], sizes = [8, 32], strides = [1, 1]} : vector<8x128xf32> to vector<8x32xf32>
    %210 = arith.negf %209 : vector<8x32xf32>
    %211 = math.exp %210 : vector<8x32xf32>
    %cst_62 = arith.constant 1.000000e+00 : f32
    %212 = vector.broadcast %cst_62 : f32 to vector<8x32xf32>
    %213 = arith.addf %212, %211 : vector<8x32xf32>
    %214 = arith.divf %212, %213 : vector<8x32xf32>
    %215 = vector.extract_strided_slice %208 {offsets = [0, 32], sizes = [8, 32], strides = [1, 1]} : vector<8x128xf32> to vector<8x32xf32>
    %216 = arith.negf %215 : vector<8x32xf32>
    %217 = math.exp %216 : vector<8x32xf32>
    %cst_63 = arith.constant 1.000000e+00 : f32
    %218 = vector.broadcast %cst_63 : f32 to vector<8x32xf32>
    %219 = arith.addf %218, %217 : vector<8x32xf32>
    %220 = arith.divf %218, %219 : vector<8x32xf32>
    %221 = vector.extract_strided_slice %208 {offsets = [0, 64], sizes = [8, 32], strides = [1, 1]} : vector<8x128xf32> to vector<8x32xf32>
    %222 = math.tanh %221 : vector<8x32xf32>
    %223 = vector.extract_strided_slice %208 {offsets = [0, 96], sizes = [8, 32], strides = [1, 1]} : vector<8x128xf32> to vector<8x32xf32>
    %224 = arith.negf %223 : vector<8x32xf32>
    %225 = math.exp %224 : vector<8x32xf32>
    %cst_64 = arith.constant 1.000000e+00 : f32
    %226 = vector.broadcast %cst_64 : f32 to vector<8x32xf32>
    %227 = arith.addf %226, %225 : vector<8x32xf32>
    %228 = arith.divf %226, %227 : vector<8x32xf32>
    %229 = arith.mulf %220, %199 : vector<8x32xf32>
    %230 = arith.mulf %214, %222 : vector<8x32xf32>
    %231 = arith.addf %229, %230 : vector<8x32xf32>
    %232 = math.tanh %231 : vector<8x32xf32>
    %233 = arith.mulf %228, %232 : vector<8x32xf32>
    %c48 = arith.constant 48 : index
    %c0_65 = arith.constant 0 : index
    %234 = vector.load %arg7[%c48, %c0_65] : memref<64x32xf32, #tpu.memory_space<vmem>>, vector<8x32xf32>
    tpu.vector_store %arg7[%c48, %c0_65], %233 {strides = array<i32>} : memref<64x32xf32, #tpu.memory_space<vmem>>, vector<8x32xf32>,
    %235 = vector.extract_strided_slice %8 {offsets = [56, 0], sizes = [8, 128], strides = [1, 1]} : vector<64x128xf32> to vector<8x128xf32>
    %236 = arith.truncf %233 : vector<8x32xf32> to vector<8x32xbf16>
    %c0_66 = arith.constant 0 : index
    %c0_67 = arith.constant 0 : index
    %c0_68 = arith.constant 0 : index
    %237 = vector.load %arg3[%c0_66, %c0_67, %c0_68] : memref<2x32x128xbf16, #tpu.memory_space<vmem>>, vector<1x32x128xbf16>
    %238 = vector.shape_cast %237 : vector<1x32x128xbf16> to vector<32x128xbf16>
    %cst_69 = arith.constant dense<0.000000e+00> : vector<8x128xf32>
    %239 = tpu.matmul %236, %238, %cst_69 {dimension_numbers = #tpu.dot_dimension_numbers<[1], [0], [0], [1], [0, 0, 1, 1], [], []>} : vector<8x32xbf16>, vector<32x128xbf16>, vector<8x128xf32> -> vector<8x128xf32>
    %240 = arith.addf %235, %239 : vector<8x128xf32>
    %241 = vector.extract_strided_slice %240 {offsets = [0, 0], sizes = [8, 32], strides = [1, 1]} : vector<8x128xf32> to vector<8x32xf32>
    %242 = arith.negf %241 : vector<8x32xf32>
    %243 = math.exp %242 : vector<8x32xf32>
    %cst_70 = arith.constant 1.000000e+00 : f32
    %244 = vector.broadcast %cst_70 : f32 to vector<8x32xf32>
    %245 = arith.addf %244, %243 : vector<8x32xf32>
    %246 = arith.divf %244, %245 : vector<8x32xf32>
    %247 = vector.extract_strided_slice %240 {offsets = [0, 32], sizes = [8, 32], strides = [1, 1]} : vector<8x128xf32> to vector<8x32xf32>
    %248 = arith.negf %247 : vector<8x32xf32>
    %249 = math.exp %248 : vector<8x32xf32>
    %cst_71 = arith.constant 1.000000e+00 : f32
    %250 = vector.broadcast %cst_71 : f32 to vector<8x32xf32>
    %251 = arith.addf %250, %249 : vector<8x32xf32>
    %252 = arith.divf %250, %251 : vector<8x32xf32>
    %253 = vector.extract_strided_slice %240 {offsets = [0, 64], sizes = [8, 32], strides = [1, 1]} : vector<8x128xf32> to vector<8x32xf32>
    %254 = math.tanh %253 : vector<8x32xf32>
    %255 = vector.extract_strided_slice %240 {offsets = [0, 96], sizes = [8, 32], strides = [1, 1]} : vector<8x128xf32> to vector<8x32xf32>
    %256 = arith.negf %255 : vector<8x32xf32>
    %257 = math.exp %256 : vector<8x32xf32>
    %cst_72 = arith.constant 1.000000e+00 : f32
    %258 = vector.broadcast %cst_72 : f32 to vector<8x32xf32>
    %259 = arith.addf %258, %257 : vector<8x32xf32>
    %260 = arith.divf %258, %259 : vector<8x32xf32>
    %261 = arith.mulf %252, %231 : vector<8x32xf32>
    %262 = arith.mulf %246, %254 : vector<8x32xf32>
    %263 = arith.addf %261, %262 : vector<8x32xf32>
    %264 = math.tanh %263 : vector<8x32xf32>
    %265 = arith.mulf %260, %264 : vector<8x32xf32>
    %c56 = arith.constant 56 : index
    %c0_73 = arith.constant 0 : index
    %266 = vector.load %arg7[%c56, %c0_73] : memref<64x32xf32, #tpu.memory_space<vmem>>, vector<8x32xf32>
    tpu.vector_store %arg7[%c56, %c0_73], %265 {strides = array<i32>} : memref<64x32xf32, #tpu.memory_space<vmem>>, vector<8x32xf32>,
    %c0_74 = arith.constant 0 : index
    %c0_75 = arith.constant 0 : index
    %c0_76 = arith.constant 0 : index
    %267 = vector.load %arg5[%c0_74, %c0_75, %c0_76] : memref<2x8x32xf32, #tpu.memory_space<vmem>>, vector<1x8x32xf32>
    %268 = vector.shape_cast %267 : vector<1x8x32xf32> to vector<8x32xf32>
    %269 = vector.shape_cast %265 : vector<8x32xf32> to vector<1x8x32xf32>
    tpu.vector_store %arg5[%c0_74, %c0_75, %c0_76], %269 {strides = array<i32>} : memref<2x8x32xf32, #tpu.memory_space<vmem>>, vector<1x8x32xf32>,
    %c0_77 = arith.constant 0 : index
    %c0_78 = arith.constant 0 : index
    %c0_79 = arith.constant 0 : index
    %270 = vector.load %arg6[%c0_77, %c0_78, %c0_79] : memref<2x8x32xf32, #tpu.memory_space<vmem>>, vector<1x8x32xf32>
    %271 = vector.shape_cast %270 : vector<1x8x32xf32> to vector<8x32xf32>
    %272 = vector.shape_cast %263 : vector<8x32xf32> to vector<1x8x32xf32>
    tpu.vector_store %arg6[%c0_77, %c0_78, %c0_79], %272 {strides = array<i32>} : memref<2x8x32xf32, #tpu.memory_space<vmem>>, vector<1x8x32xf32>,
    %c0_80 = arith.constant 0 : index
    %c0_81 = arith.constant 0 : index
    %273 = vector.load %arg7[%c0_80, %c0_81] : memref<64x32xf32, #tpu.memory_space<vmem>>, vector<64x32xf32>
    %274 = arith.truncf %273 : vector<64x32xf32> to vector<64x32xbf16>
    %c1 = arith.constant 1 : index
    %c0_82 = arith.constant 0 : index
    %c0_83 = arith.constant 0 : index
    %275 = vector.load %arg2[%c1, %c0_82, %c0_83] : memref<2x32x128xbf16, #tpu.memory_space<vmem>>, vector<1x32x128xbf16>
    %276 = vector.shape_cast %275 : vector<1x32x128xbf16> to vector<32x128xbf16>
    %cst_84 = arith.constant dense<0.000000e+00> : vector<64x128xf32>
    %277 = tpu.matmul %274, %276, %cst_84 {dimension_numbers = #tpu.dot_dimension_numbers<[1], [0], [0], [1], [0, 0, 1, 1], [], []>} : vector<64x32xbf16>, vector<32x128xbf16>, vector<64x128xf32> -> vector<64x128xf32>
    %c1_85 = arith.constant 1 : index
    %c0_86 = arith.constant 0 : index
    %c0_87 = arith.constant 0 : index
    %278 = vector.load %arg4[%c1_85, %c0_86, %c0_87] : memref<2x1x128xf32, #tpu.memory_space<vmem>>, vector<1x1x128xf32>
    %279 = vector.shape_cast %278 : vector<1x1x128xf32> to vector<1x128xf32>
    %280 = vector.broadcast %279 : vector<1x128xf32> to vector<64x128xf32>
    %281 = arith.addf %277, %280 : vector<64x128xf32>
    %cst_88 = arith.constant 0.000000e+00 : f32
    %282 = vector.broadcast %cst_88 : f32 to vector<8x32xf32>
    %cst_89 = arith.constant 0.000000e+00 : f32
    %283 = vector.broadcast %cst_89 : f32 to vector<8x32xf32>
    %284 = vector.extract_strided_slice %281 {offsets = [0, 0], sizes = [8, 128], strides = [1, 1]} : vector<64x128xf32> to vector<8x128xf32>
    %285 = arith.truncf %282 : vector<8x32xf32> to vector<8x32xbf16>
    %c1_90 = arith.constant 1 : index
    %c0_91 = arith.constant 0 : index
    %c0_92 = arith.constant 0 : index
    %286 = vector.load %arg3[%c1_90, %c0_91, %c0_92] : memref<2x32x128xbf16, #tpu.memory_space<vmem>>, vector<1x32x128xbf16>
    %287 = vector.shape_cast %286 : vector<1x32x128xbf16> to vector<32x128xbf16>
    %cst_93 = arith.constant dense<0.000000e+00> : vector<8x128xf32>
    %288 = tpu.matmul %285, %287, %cst_93 {dimension_numbers = #tpu.dot_dimension_numbers<[1], [0], [0], [1], [0, 0, 1, 1], [], []>} : vector<8x32xbf16>, vector<32x128xbf16>, vector<8x128xf32> -> vector<8x128xf32>
    %289 = arith.addf %284, %288 : vector<8x128xf32>
    %290 = vector.extract_strided_slice %289 {offsets = [0, 0], sizes = [8, 32], strides = [1, 1]} : vector<8x128xf32> to vector<8x32xf32>
    %291 = arith.negf %290 : vector<8x32xf32>
    %292 = math.exp %291 : vector<8x32xf32>
    %cst_94 = arith.constant 1.000000e+00 : f32
    %293 = vector.broadcast %cst_94 : f32 to vector<8x32xf32>
    %294 = arith.addf %293, %292 : vector<8x32xf32>
    %295 = arith.divf %293, %294 : vector<8x32xf32>
    %296 = vector.extract_strided_slice %289 {offsets = [0, 32], sizes = [8, 32], strides = [1, 1]} : vector<8x128xf32> to vector<8x32xf32>
    %297 = arith.negf %296 : vector<8x32xf32>
    %298 = math.exp %297 : vector<8x32xf32>
    %cst_95 = arith.constant 1.000000e+00 : f32
    %299 = vector.broadcast %cst_95 : f32 to vector<8x32xf32>
    %300 = arith.addf %299, %298 : vector<8x32xf32>
    %301 = arith.divf %299, %300 : vector<8x32xf32>
    %302 = vector.extract_strided_slice %289 {offsets = [0, 64], sizes = [8, 32], strides = [1, 1]} : vector<8x128xf32> to vector<8x32xf32>
    %303 = math.tanh %302 : vector<8x32xf32>
    %304 = vector.extract_strided_slice %289 {offsets = [0, 96], sizes = [8, 32], strides = [1, 1]} : vector<8x128xf32> to vector<8x32xf32>
    %305 = arith.negf %304 : vector<8x32xf32>
    %306 = math.exp %305 : vector<8x32xf32>
    %cst_96 = arith.constant 1.000000e+00 : f32
    %307 = vector.broadcast %cst_96 : f32 to vector<8x32xf32>
    %308 = arith.addf %307, %306 : vector<8x32xf32>
    %309 = arith.divf %307, %308 : vector<8x32xf32>
    %310 = arith.mulf %301, %283 : vector<8x32xf32>
    %311 = arith.mulf %295, %303 : vector<8x32xf32>
    %312 = arith.addf %310, %311 : vector<8x32xf32>
    %313 = math.tanh %312 : vector<8x32xf32>
    %314 = arith.mulf %309, %313 : vector<8x32xf32>
    %315 = vector.extract_strided_slice %281 {offsets = [8, 0], sizes = [8, 128], strides = [1, 1]} : vector<64x128xf32> to vector<8x128xf32>
    %316 = arith.truncf %314 : vector<8x32xf32> to vector<8x32xbf16>
    %c1_97 = arith.constant 1 : index
    %c0_98 = arith.constant 0 : index
    %c0_99 = arith.constant 0 : index
    %317 = vector.load %arg3[%c1_97, %c0_98, %c0_99] : memref<2x32x128xbf16, #tpu.memory_space<vmem>>, vector<1x32x128xbf16>
    %318 = vector.shape_cast %317 : vector<1x32x128xbf16> to vector<32x128xbf16>
    %cst_100 = arith.constant dense<0.000000e+00> : vector<8x128xf32>
    %319 = tpu.matmul %316, %318, %cst_100 {dimension_numbers = #tpu.dot_dimension_numbers<[1], [0], [0], [1], [0, 0, 1, 1], [], []>} : vector<8x32xbf16>, vector<32x128xbf16>, vector<8x128xf32> -> vector<8x128xf32>
    %320 = arith.addf %315, %319 : vector<8x128xf32>
    %321 = vector.extract_strided_slice %320 {offsets = [0, 0], sizes = [8, 32], strides = [1, 1]} : vector<8x128xf32> to vector<8x32xf32>
    %322 = arith.negf %321 : vector<8x32xf32>
    %323 = math.exp %322 : vector<8x32xf32>
    %cst_101 = arith.constant 1.000000e+00 : f32
    %324 = vector.broadcast %cst_101 : f32 to vector<8x32xf32>
    %325 = arith.addf %324, %323 : vector<8x32xf32>
    %326 = arith.divf %324, %325 : vector<8x32xf32>
    %327 = vector.extract_strided_slice %320 {offsets = [0, 32], sizes = [8, 32], strides = [1, 1]} : vector<8x128xf32> to vector<8x32xf32>
    %328 = arith.negf %327 : vector<8x32xf32>
    %329 = math.exp %328 : vector<8x32xf32>
    %cst_102 = arith.constant 1.000000e+00 : f32
    %330 = vector.broadcast %cst_102 : f32 to vector<8x32xf32>
    %331 = arith.addf %330, %329 : vector<8x32xf32>
    %332 = arith.divf %330, %331 : vector<8x32xf32>
    %333 = vector.extract_strided_slice %320 {offsets = [0, 64], sizes = [8, 32], strides = [1, 1]} : vector<8x128xf32> to vector<8x32xf32>
    %334 = math.tanh %333 : vector<8x32xf32>
    %335 = vector.extract_strided_slice %320 {offsets = [0, 96], sizes = [8, 32], strides = [1, 1]} : vector<8x128xf32> to vector<8x32xf32>
    %336 = arith.negf %335 : vector<8x32xf32>
    %337 = math.exp %336 : vector<8x32xf32>
    %cst_103 = arith.constant 1.000000e+00 : f32
    %338 = vector.broadcast %cst_103 : f32 to vector<8x32xf32>
    %339 = arith.addf %338, %337 : vector<8x32xf32>
    %340 = arith.divf %338, %339 : vector<8x32xf32>
    %341 = arith.mulf %332, %312 : vector<8x32xf32>
    %342 = arith.mulf %326, %334 : vector<8x32xf32>
    %343 = arith.addf %341, %342 : vector<8x32xf32>
    %344 = math.tanh %343 : vector<8x32xf32>
    %345 = arith.mulf %340, %344 : vector<8x32xf32>
    %346 = vector.extract_strided_slice %281 {offsets = [16, 0], sizes = [8, 128], strides = [1, 1]} : vector<64x128xf32> to vector<8x128xf32>
    %347 = arith.truncf %345 : vector<8x32xf32> to vector<8x32xbf16>
    %c1_104 = arith.constant 1 : index
    %c0_105 = arith.constant 0 : index
    %c0_106 = arith.constant 0 : index
    %348 = vector.load %arg3[%c1_104, %c0_105, %c0_106] : memref<2x32x128xbf16, #tpu.memory_space<vmem>>, vector<1x32x128xbf16>
    %349 = vector.shape_cast %348 : vector<1x32x128xbf16> to vector<32x128xbf16>
    %cst_107 = arith.constant dense<0.000000e+00> : vector<8x128xf32>
    %350 = tpu.matmul %347, %349, %cst_107 {dimension_numbers = #tpu.dot_dimension_numbers<[1], [0], [0], [1], [0, 0, 1, 1], [], []>} : vector<8x32xbf16>, vector<32x128xbf16>, vector<8x128xf32> -> vector<8x128xf32>
    %351 = arith.addf %346, %350 : vector<8x128xf32>
    %352 = vector.extract_strided_slice %351 {offsets = [0, 0], sizes = [8, 32], strides = [1, 1]} : vector<8x128xf32> to vector<8x32xf32>
    %353 = arith.negf %352 : vector<8x32xf32>
    %354 = math.exp %353 : vector<8x32xf32>
    %cst_108 = arith.constant 1.000000e+00 : f32
    %355 = vector.broadcast %cst_108 : f32 to vector<8x32xf32>
    %356 = arith.addf %355, %354 : vector<8x32xf32>
    %357 = arith.divf %355, %356 : vector<8x32xf32>
    %358 = vector.extract_strided_slice %351 {offsets = [0, 32], sizes = [8, 32], strides = [1, 1]} : vector<8x128xf32> to vector<8x32xf32>
    %359 = arith.negf %358 : vector<8x32xf32>
    %360 = math.exp %359 : vector<8x32xf32>
    %cst_109 = arith.constant 1.000000e+00 : f32
    %361 = vector.broadcast %cst_109 : f32 to vector<8x32xf32>
    %362 = arith.addf %361, %360 : vector<8x32xf32>
    %363 = arith.divf %361, %362 : vector<8x32xf32>
    %364 = vector.extract_strided_slice %351 {offsets = [0, 64], sizes = [8, 32], strides = [1, 1]} : vector<8x128xf32> to vector<8x32xf32>
    %365 = math.tanh %364 : vector<8x32xf32>
    %366 = vector.extract_strided_slice %351 {offsets = [0, 96], sizes = [8, 32], strides = [1, 1]} : vector<8x128xf32> to vector<8x32xf32>
    %367 = arith.negf %366 : vector<8x32xf32>
    %368 = math.exp %367 : vector<8x32xf32>
    %cst_110 = arith.constant 1.000000e+00 : f32
    %369 = vector.broadcast %cst_110 : f32 to vector<8x32xf32>
    %370 = arith.addf %369, %368 : vector<8x32xf32>
    %371 = arith.divf %369, %370 : vector<8x32xf32>
    %372 = arith.mulf %363, %343 : vector<8x32xf32>
    %373 = arith.mulf %357, %365 : vector<8x32xf32>
    %374 = arith.addf %372, %373 : vector<8x32xf32>
    %375 = math.tanh %374 : vector<8x32xf32>
    %376 = arith.mulf %371, %375 : vector<8x32xf32>
    %377 = vector.extract_strided_slice %281 {offsets = [24, 0], sizes = [8, 128], strides = [1, 1]} : vector<64x128xf32> to vector<8x128xf32>
    %378 = arith.truncf %376 : vector<8x32xf32> to vector<8x32xbf16>
    %c1_111 = arith.constant 1 : index
    %c0_112 = arith.constant 0 : index
    %c0_113 = arith.constant 0 : index
    %379 = vector.load %arg3[%c1_111, %c0_112, %c0_113] : memref<2x32x128xbf16, #tpu.memory_space<vmem>>, vector<1x32x128xbf16>
    %380 = vector.shape_cast %379 : vector<1x32x128xbf16> to vector<32x128xbf16>
    %cst_114 = arith.constant dense<0.000000e+00> : vector<8x128xf32>
    %381 = tpu.matmul %378, %380, %cst_114 {dimension_numbers = #tpu.dot_dimension_numbers<[1], [0], [0], [1], [0, 0, 1, 1], [], []>} : vector<8x32xbf16>, vector<32x128xbf16>, vector<8x128xf32> -> vector<8x128xf32>
    %382 = arith.addf %377, %381 : vector<8x128xf32>
    %383 = vector.extract_strided_slice %382 {offsets = [0, 0], sizes = [8, 32], strides = [1, 1]} : vector<8x128xf32> to vector<8x32xf32>
    %384 = arith.negf %383 : vector<8x32xf32>
    %385 = math.exp %384 : vector<8x32xf32>
    %cst_115 = arith.constant 1.000000e+00 : f32
    %386 = vector.broadcast %cst_115 : f32 to vector<8x32xf32>
    %387 = arith.addf %386, %385 : vector<8x32xf32>
    %388 = arith.divf %386, %387 : vector<8x32xf32>
    %389 = vector.extract_strided_slice %382 {offsets = [0, 32], sizes = [8, 32], strides = [1, 1]} : vector<8x128xf32> to vector<8x32xf32>
    %390 = arith.negf %389 : vector<8x32xf32>
    %391 = math.exp %390 : vector<8x32xf32>
    %cst_116 = arith.constant 1.000000e+00 : f32
    %392 = vector.broadcast %cst_116 : f32 to vector<8x32xf32>
    %393 = arith.addf %392, %391 : vector<8x32xf32>
    %394 = arith.divf %392, %393 : vector<8x32xf32>
    %395 = vector.extract_strided_slice %382 {offsets = [0, 64], sizes = [8, 32], strides = [1, 1]} : vector<8x128xf32> to vector<8x32xf32>
    %396 = math.tanh %395 : vector<8x32xf32>
    %397 = vector.extract_strided_slice %382 {offsets = [0, 96], sizes = [8, 32], strides = [1, 1]} : vector<8x128xf32> to vector<8x32xf32>
    %398 = arith.negf %397 : vector<8x32xf32>
    %399 = math.exp %398 : vector<8x32xf32>
    %cst_117 = arith.constant 1.000000e+00 : f32
    %400 = vector.broadcast %cst_117 : f32 to vector<8x32xf32>
    %401 = arith.addf %400, %399 : vector<8x32xf32>
    %402 = arith.divf %400, %401 : vector<8x32xf32>
    %403 = arith.mulf %394, %374 : vector<8x32xf32>
    %404 = arith.mulf %388, %396 : vector<8x32xf32>
    %405 = arith.addf %403, %404 : vector<8x32xf32>
    %406 = math.tanh %405 : vector<8x32xf32>
    %407 = arith.mulf %402, %406 : vector<8x32xf32>
    %408 = vector.extract_strided_slice %281 {offsets = [32, 0], sizes = [8, 128], strides = [1, 1]} : vector<64x128xf32> to vector<8x128xf32>
    %409 = arith.truncf %407 : vector<8x32xf32> to vector<8x32xbf16>
    %c1_118 = arith.constant 1 : index
    %c0_119 = arith.constant 0 : index
    %c0_120 = arith.constant 0 : index
    %410 = vector.load %arg3[%c1_118, %c0_119, %c0_120] : memref<2x32x128xbf16, #tpu.memory_space<vmem>>, vector<1x32x128xbf16>
    %411 = vector.shape_cast %410 : vector<1x32x128xbf16> to vector<32x128xbf16>
    %cst_121 = arith.constant dense<0.000000e+00> : vector<8x128xf32>
    %412 = tpu.matmul %409, %411, %cst_121 {dimension_numbers = #tpu.dot_dimension_numbers<[1], [0], [0], [1], [0, 0, 1, 1], [], []>} : vector<8x32xbf16>, vector<32x128xbf16>, vector<8x128xf32> -> vector<8x128xf32>
    %413 = arith.addf %408, %412 : vector<8x128xf32>
    %414 = vector.extract_strided_slice %413 {offsets = [0, 0], sizes = [8, 32], strides = [1, 1]} : vector<8x128xf32> to vector<8x32xf32>
    %415 = arith.negf %414 : vector<8x32xf32>
    %416 = math.exp %415 : vector<8x32xf32>
    %cst_122 = arith.constant 1.000000e+00 : f32
    %417 = vector.broadcast %cst_122 : f32 to vector<8x32xf32>
    %418 = arith.addf %417, %416 : vector<8x32xf32>
    %419 = arith.divf %417, %418 : vector<8x32xf32>
    %420 = vector.extract_strided_slice %413 {offsets = [0, 32], sizes = [8, 32], strides = [1, 1]} : vector<8x128xf32> to vector<8x32xf32>
    %421 = arith.negf %420 : vector<8x32xf32>
    %422 = math.exp %421 : vector<8x32xf32>
    %cst_123 = arith.constant 1.000000e+00 : f32
    %423 = vector.broadcast %cst_123 : f32 to vector<8x32xf32>
    %424 = arith.addf %423, %422 : vector<8x32xf32>
    %425 = arith.divf %423, %424 : vector<8x32xf32>
    %426 = vector.extract_strided_slice %413 {offsets = [0, 64], sizes = [8, 32], strides = [1, 1]} : vector<8x128xf32> to vector<8x32xf32>
    %427 = math.tanh %426 : vector<8x32xf32>
    %428 = vector.extract_strided_slice %413 {offsets = [0, 96], sizes = [8, 32], strides = [1, 1]} : vector<8x128xf32> to vector<8x32xf32>
    %429 = arith.negf %428 : vector<8x32xf32>
    %430 = math.exp %429 : vector<8x32xf32>
    %cst_124 = arith.constant 1.000000e+00 : f32
    %431 = vector.broadcast %cst_124 : f32 to vector<8x32xf32>
    %432 = arith.addf %431, %430 : vector<8x32xf32>
    %433 = arith.divf %431, %432 : vector<8x32xf32>
    %434 = arith.mulf %425, %405 : vector<8x32xf32>
    %435 = arith.mulf %419, %427 : vector<8x32xf32>
    %436 = arith.addf %434, %435 : vector<8x32xf32>
    %437 = math.tanh %436 : vector<8x32xf32>
    %438 = arith.mulf %433, %437 : vector<8x32xf32>
    %439 = vector.extract_strided_slice %281 {offsets = [40, 0], sizes = [8, 128], strides = [1, 1]} : vector<64x128xf32> to vector<8x128xf32>
    %440 = arith.truncf %438 : vector<8x32xf32> to vector<8x32xbf16>
    %c1_125 = arith.constant 1 : index
    %c0_126 = arith.constant 0 : index
    %c0_127 = arith.constant 0 : index
    %441 = vector.load %arg3[%c1_125, %c0_126, %c0_127] : memref<2x32x128xbf16, #tpu.memory_space<vmem>>, vector<1x32x128xbf16>
    %442 = vector.shape_cast %441 : vector<1x32x128xbf16> to vector<32x128xbf16>
    %cst_128 = arith.constant dense<0.000000e+00> : vector<8x128xf32>
    %443 = tpu.matmul %440, %442, %cst_128 {dimension_numbers = #tpu.dot_dimension_numbers<[1], [0], [0], [1], [0, 0, 1, 1], [], []>} : vector<8x32xbf16>, vector<32x128xbf16>, vector<8x128xf32> -> vector<8x128xf32>
    %444 = arith.addf %439, %443 : vector<8x128xf32>
    %445 = vector.extract_strided_slice %444 {offsets = [0, 0], sizes = [8, 32], strides = [1, 1]} : vector<8x128xf32> to vector<8x32xf32>
    %446 = arith.negf %445 : vector<8x32xf32>
    %447 = math.exp %446 : vector<8x32xf32>
    %cst_129 = arith.constant 1.000000e+00 : f32
    %448 = vector.broadcast %cst_129 : f32 to vector<8x32xf32>
    %449 = arith.addf %448, %447 : vector<8x32xf32>
    %450 = arith.divf %448, %449 : vector<8x32xf32>
    %451 = vector.extract_strided_slice %444 {offsets = [0, 32], sizes = [8, 32], strides = [1, 1]} : vector<8x128xf32> to vector<8x32xf32>
    %452 = arith.negf %451 : vector<8x32xf32>
    %453 = math.exp %452 : vector<8x32xf32>
    %cst_130 = arith.constant 1.000000e+00 : f32
    %454 = vector.broadcast %cst_130 : f32 to vector<8x32xf32>
    %455 = arith.addf %454, %453 : vector<8x32xf32>
    %456 = arith.divf %454, %455 : vector<8x32xf32>
    %457 = vector.extract_strided_slice %444 {offsets = [0, 64], sizes = [8, 32], strides = [1, 1]} : vector<8x128xf32> to vector<8x32xf32>
    %458 = math.tanh %457 : vector<8x32xf32>
    %459 = vector.extract_strided_slice %444 {offsets = [0, 96], sizes = [8, 32], strides = [1, 1]} : vector<8x128xf32> to vector<8x32xf32>
    %460 = arith.negf %459 : vector<8x32xf32>
    %461 = math.exp %460 : vector<8x32xf32>
    %cst_131 = arith.constant 1.000000e+00 : f32
    %462 = vector.broadcast %cst_131 : f32 to vector<8x32xf32>
    %463 = arith.addf %462, %461 : vector<8x32xf32>
    %464 = arith.divf %462, %463 : vector<8x32xf32>
    %465 = arith.mulf %456, %436 : vector<8x32xf32>
    %466 = arith.mulf %450, %458 : vector<8x32xf32>
    %467 = arith.addf %465, %466 : vector<8x32xf32>
    %468 = math.tanh %467 : vector<8x32xf32>
    %469 = arith.mulf %464, %468 : vector<8x32xf32>
    %470 = vector.extract_strided_slice %281 {offsets = [48, 0], sizes = [8, 128], strides = [1, 1]} : vector<64x128xf32> to vector<8x128xf32>
    %471 = arith.truncf %469 : vector<8x32xf32> to vector<8x32xbf16>
    %c1_132 = arith.constant 1 : index
    %c0_133 = arith.constant 0 : index
    %c0_134 = arith.constant 0 : index
    %472 = vector.load %arg3[%c1_132, %c0_133, %c0_134] : memref<2x32x128xbf16, #tpu.memory_space<vmem>>, vector<1x32x128xbf16>
    %473 = vector.shape_cast %472 : vector<1x32x128xbf16> to vector<32x128xbf16>
    %cst_135 = arith.constant dense<0.000000e+00> : vector<8x128xf32>
    %474 = tpu.matmul %471, %473, %cst_135 {dimension_numbers = #tpu.dot_dimension_numbers<[1], [0], [0], [1], [0, 0, 1, 1], [], []>} : vector<8x32xbf16>, vector<32x128xbf16>, vector<8x128xf32> -> vector<8x128xf32>
    %475 = arith.addf %470, %474 : vector<8x128xf32>
    %476 = vector.extract_strided_slice %475 {offsets = [0, 0], sizes = [8, 32], strides = [1, 1]} : vector<8x128xf32> to vector<8x32xf32>
    %477 = arith.negf %476 : vector<8x32xf32>
    %478 = math.exp %477 : vector<8x32xf32>
    %cst_136 = arith.constant 1.000000e+00 : f32
    %479 = vector.broadcast %cst_136 : f32 to vector<8x32xf32>
    %480 = arith.addf %479, %478 : vector<8x32xf32>
    %481 = arith.divf %479, %480 : vector<8x32xf32>
    %482 = vector.extract_strided_slice %475 {offsets = [0, 32], sizes = [8, 32], strides = [1, 1]} : vector<8x128xf32> to vector<8x32xf32>
    %483 = arith.negf %482 : vector<8x32xf32>
    %484 = math.exp %483 : vector<8x32xf32>
    %cst_137 = arith.constant 1.000000e+00 : f32
    %485 = vector.broadcast %cst_137 : f32 to vector<8x32xf32>
    %486 = arith.addf %485, %484 : vector<8x32xf32>
    %487 = arith.divf %485, %486 : vector<8x32xf32>
    %488 = vector.extract_strided_slice %475 {offsets = [0, 64], sizes = [8, 32], strides = [1, 1]} : vector<8x128xf32> to vector<8x32xf32>
    %489 = math.tanh %488 : vector<8x32xf32>
    %490 = vector.extract_strided_slice %475 {offsets = [0, 96], sizes = [8, 32], strides = [1, 1]} : vector<8x128xf32> to vector<8x32xf32>
    %491 = arith.negf %490 : vector<8x32xf32>
    %492 = math.exp %491 : vector<8x32xf32>
    %cst_138 = arith.constant 1.000000e+00 : f32
    %493 = vector.broadcast %cst_138 : f32 to vector<8x32xf32>
    %494 = arith.addf %493, %492 : vector<8x32xf32>
    %495 = arith.divf %493, %494 : vector<8x32xf32>
    %496 = arith.mulf %487, %467 : vector<8x32xf32>
    %497 = arith.mulf %481, %489 : vector<8x32xf32>
    %498 = arith.addf %496, %497 : vector<8x32xf32>
    %499 = math.tanh %498 : vector<8x32xf32>
    %500 = arith.mulf %495, %499 : vector<8x32xf32>
    %501 = vector.extract_strided_slice %281 {offsets = [56, 0], sizes = [8, 128], strides = [1, 1]} : vector<64x128xf32> to vector<8x128xf32>
    %502 = arith.truncf %500 : vector<8x32xf32> to vector<8x32xbf16>
    %c1_139 = arith.constant 1 : index
    %c0_140 = arith.constant 0 : index
    %c0_141 = arith.constant 0 : index
    %503 = vector.load %arg3[%c1_139, %c0_140, %c0_141] : memref<2x32x128xbf16, #tpu.memory_space<vmem>>, vector<1x32x128xbf16>
    %504 = vector.shape_cast %503 : vector<1x32x128xbf16> to vector<32x128xbf16>
    %cst_142 = arith.constant dense<0.000000e+00> : vector<8x128xf32>
    %505 = tpu.matmul %502, %504, %cst_142 {dimension_numbers = #tpu.dot_dimension_numbers<[1], [0], [0], [1], [0, 0, 1, 1], [], []>} : vector<8x32xbf16>, vector<32x128xbf16>, vector<8x128xf32> -> vector<8x128xf32>
    %506 = arith.addf %501, %505 : vector<8x128xf32>
    %507 = vector.extract_strided_slice %506 {offsets = [0, 0], sizes = [8, 32], strides = [1, 1]} : vector<8x128xf32> to vector<8x32xf32>
    %508 = arith.negf %507 : vector<8x32xf32>
    %509 = math.exp %508 : vector<8x32xf32>
    %cst_143 = arith.constant 1.000000e+00 : f32
    %510 = vector.broadcast %cst_143 : f32 to vector<8x32xf32>
    %511 = arith.addf %510, %509 : vector<8x32xf32>
    %512 = arith.divf %510, %511 : vector<8x32xf32>
    %513 = vector.extract_strided_slice %506 {offsets = [0, 32], sizes = [8, 32], strides = [1, 1]} : vector<8x128xf32> to vector<8x32xf32>
    %514 = arith.negf %513 : vector<8x32xf32>
    %515 = math.exp %514 : vector<8x32xf32>
    %cst_144 = arith.constant 1.000000e+00 : f32
    %516 = vector.broadcast %cst_144 : f32 to vector<8x32xf32>
    %517 = arith.addf %516, %515 : vector<8x32xf32>
    %518 = arith.divf %516, %517 : vector<8x32xf32>
    %519 = vector.extract_strided_slice %506 {offsets = [0, 64], sizes = [8, 32], strides = [1, 1]} : vector<8x128xf32> to vector<8x32xf32>
    %520 = math.tanh %519 : vector<8x32xf32>
    %521 = vector.extract_strided_slice %506 {offsets = [0, 96], sizes = [8, 32], strides = [1, 1]} : vector<8x128xf32> to vector<8x32xf32>
    %522 = arith.negf %521 : vector<8x32xf32>
    %523 = math.exp %522 : vector<8x32xf32>
    %cst_145 = arith.constant 1.000000e+00 : f32
    %524 = vector.broadcast %cst_145 : f32 to vector<8x32xf32>
    %525 = arith.addf %524, %523 : vector<8x32xf32>
    %526 = arith.divf %524, %525 : vector<8x32xf32>
    %527 = arith.mulf %518, %498 : vector<8x32xf32>
    %528 = arith.mulf %512, %520 : vector<8x32xf32>
    %529 = arith.addf %527, %528 : vector<8x32xf32>
    %530 = math.tanh %529 : vector<8x32xf32>
    %531 = arith.mulf %526, %530 : vector<8x32xf32>
    %c1_146 = arith.constant 1 : index
    %c0_147 = arith.constant 0 : index
    %c0_148 = arith.constant 0 : index
    %532 = vector.load %arg5[%c1_146, %c0_147, %c0_148] : memref<2x8x32xf32, #tpu.memory_space<vmem>>, vector<1x8x32xf32>
    %533 = vector.shape_cast %532 : vector<1x8x32xf32> to vector<8x32xf32>
    %534 = vector.shape_cast %531 : vector<8x32xf32> to vector<1x8x32xf32>
    tpu.vector_store %arg5[%c1_146, %c0_147, %c0_148], %534 {strides = array<i32>} : memref<2x8x32xf32, #tpu.memory_space<vmem>>, vector<1x8x32xf32>,
    %c1_149 = arith.constant 1 : index
    %c0_150 = arith.constant 0 : index
    %c0_151 = arith.constant 0 : index
    %535 = vector.load %arg6[%c1_149, %c0_150, %c0_151] : memref<2x8x32xf32, #tpu.memory_space<vmem>>, vector<1x8x32xf32>
    %536 = vector.shape_cast %535 : vector<1x8x32xf32> to vector<8x32xf32>
    %537 = vector.shape_cast %529 : vector<8x32xf32> to vector<1x8x32xf32>
    tpu.vector_store %arg6[%c1_149, %c0_150, %c0_151], %537 {strides = array<i32>} : memref<2x8x32xf32, #tpu.memory_space<vmem>>, vector<1x8x32xf32>,
    return
  }
  func.func @transform_0(%arg0: i32) -> (i32, i32) {
    %c0_i32 = arith.constant 0 : i32
    %c0_i32_0 = arith.constant 0 : i32
    %c0_i32_1 = arith.constant 0 : i32
    return %c0_i32, %c0_i32_0 : i32, i32
  }
  func.func @transform_1(%arg0: i32) -> (i32, i32, i32) {
    %c0_i32 = arith.constant 0 : i32
    %c0_i32_0 = arith.constant 0 : i32
    %c0_i32_1 = arith.constant 0 : i32
    %c0_i32_2 = arith.constant 0 : i32
    return %c0_i32, %c0_i32_0, %c0_i32_1 : i32, i32, i32
  }
  func.func @transform_2(%arg0: i32) -> (i32, i32, i32) {
    %c0_i32 = arith.constant 0 : i32
    %c0_i32_0 = arith.constant 0 : i32
    %c0_i32_1 = arith.constant 0 : i32
    %c0_i32_2 = arith.constant 0 : i32
    return %c0_i32, %c0_i32_0, %c0_i32_1 : i32, i32, i32
  }
  func.func @transform_3(%arg0: i32) -> (i32, i32, i32) {
    %c0_i32 = arith.constant 0 : i32
    %c0_i32_0 = arith.constant 0 : i32
    %c0_i32_1 = arith.constant 0 : i32
    %c0_i32_2 = arith.constant 0 : i32
    return %c0_i32, %c0_i32_0, %c0_i32_1 : i32, i32, i32
  }
  func.func @transform_4(%arg0: i32) -> (i32, i32, i32) {
    %c0_i32 = arith.constant 0 : i32
    %c0_i32_0 = arith.constant 0 : i32
    %c0_i32_1 = arith.constant 0 : i32
    %c0_i32_2 = arith.constant 0 : i32
    return %c0_i32, %c0_i32_0, %c0_i32_1 : i32, i32, i32
  }
  func.func @transform_5(%arg0: i32) -> (i32, i32, i32) {
    %c0_i32 = arith.constant 0 : i32
    %c0_i32_0 = arith.constant 0 : i32
    %c0_i32_1 = arith.constant 0 : i32
    %c0_i32_2 = arith.constant 0 : i32
    return %c0_i32, %c0_i32_0, %c0_i32_1 : i32, i32, i32
  }
}

</mosaic_0001>

<bundles_post_ra>
// kernel: tpu_custom_call.1
= control target key start
LH: loop header
LB: loop body
LE: loop exit
PB: predicated region body
PF: predicated region fallthrough
CT: control target
= control target key end

     0   :  { %11 = vsyncpa [#allocation4], 0  ;;  %s2023_s0 = inlined_call_operand.vmem [shape: f32[64,32], index: 0, kind: input, shape index: {}]   ;;  %s2024_s1 = inlined_call_operand.vmem [shape: bf16[2,32,128], index: 1, kind: input, shape index: {}]   ;;  %s2025_s2 = inlined_call_operand.vmem [shape: bf16[2,32,128], index: 2, kind: input, shape index: {}]   ;;  %s2026_s3 = inlined_call_operand.vmem [shape: f32[2,1,128], index: 3, kind: input, shape index: {}]   ;;  %s2027_s4 = inlined_call_operand.hbm [shape: f32[2,8,32], index: 4, kind: output, shape index: {0}]   ;;  %s2028_s5 = inlined_call_operand.hbm [shape: f32[2,8,32], index: 5, kind: output, shape index: {1}]  }
   0x1   :  { %v1463_v0 = vld [vmem:[%s2024_s1 + $0x8] sm:$0xff]  ;;  %v1462_v2 = vld [vmem:[%s2024_s1] sm:$0xff] }
   0x2   :  { %v1465_v1 = vld [vmem:[%s2025_s2 + $0x8] sm:$0xff]  ;;  %v1464_v3 = vld [vmem:[%s2025_s2] sm:$0xff]  ;;  %73 = vmatpush.bf16.msra.mxu0 %v1463_v0 }
   0x3   :  { %v22_v4 = vld [vmem:[%s2023_s0] sm:$0xff]  ;;  %121 = vmatpush.bf16.msra.mxu1 %v1465_v1  ;;  %v23_v5 = vld [vmem:[%s2023_s0 + $0x8] sm:$0xff] }
   0x4   :  { %12 = vsyncpa [#allocation6], 0  ;;  %v30_v6 = vpack.c.bf16 %v23_v5, %v22_v4  ;;  %vm54_vm0 = vcmask 261120   ;;  %v1675_v7 = vmov 0   ;;  %v1736_v8 = vld [vmem:[%s2026_s3] ss:$0 sm:$0xff] }
   0x5   :  { %s1676_s7 = smov 64   ;;  %s1677_s8 = smov 32   ;;  %v1467_v34 = vld [vmem:[%s2025_s2 + $0x8] sm:$0xff]  ;;  %v1466_v35 = vld [vmem:[%s2025_s2] sm:$0xff] }
   0x6   :  { %74 = vmatpush.bf16.msra.mxu0 %v1462_v2  ;;  %200 = vmatpush.bf16.msra.mxu2 %v1467_v34  ;;  %v1469_v1 = vld [vmem:[%s2025_s2 + $0x8] sm:$0xff]  ;;  %v24_v2 = vld [vmem:[%s2023_s0 + $0x10] sm:$0xff]  ;;  %v1468_v5 = vld [vmem:[%s2025_s2] sm:$0xff]  ;;  %s1679_s12 = smov [#allocation5]   ;;  %s1310_s16 = sshll.u32 %s2028_s5, 4  ;;  %s1311_s16 = int_to_ptr.hbm [resolvable:$true] %s1310_s16 }
   0x7   :  { %122 = vmatpush.bf16.msra.mxu1 %v1464_v3  ;;  %v25_v3 = vld [vmem:[%s2023_s0 + $0x18] sm:$0xff]  ;;  %279 = vmatpush.bf16.msra.mxu3 %v1469_v1  ;;  %s1308_s13 = sshll.u32 %s1679_s12, 4  ;;  %s1680_s17 = smov 128   ;;  %s1309_s13 = int_to_ptr.vmem [resolvable:$true] %s1308_s13 }
   0x8   :  { %v31_v4 = vpack.c.bf16 %v25_v3, %v24_v2 }
   0x9   :  { %1335 = vmatmul.msk.bf16.vlgmr.msra.gmra.mxu0 %vm54_vm0, %v30_v6 }
   0xa   :  { %123 = vmatmul.bf16.vlgmr.msra.gmra.mxu1 %v1675_v7  ;;  %201 = vmatpush.bf16.msra.mxu2 %v1466_v35 }
   0xb   :  { %280 = vmatpush.bf16.msra.mxu3 %v1468_v5  ;;  %v1473_v5 = vld [vmem:[%s2025_s2 + $0x8] sm:$0xff] }
   0xe   :  { %437 = vmatpush.bf16.msrb.mxu2 %v1473_v5 }
  0x19   :  { %1336 = vmatmul.msk.bf16.gmra.mxu0 %vm54_vm0, %v31_v4 }
  0x86   :  { %v76_v9 = vpop.f32.mrf.mxu0 }
  0x87   :  { %v124_v10 = vpop.f32.mrf.mxu1  ;;  %v77_v11 = vadd.f32 %v1736_v8, %v76_v9 }
  0x89   :  { %v128_v12 = vadd.f32 %v124_v10, %v77_v11 }
  0x8b   :  { %1494 = vtanh.f32 %v128_v12  ;;  %v1347_v15 = vmul.f32 -1.442695, %v128_v12 }
  0x8d   :  { %1496 = vpow2.f32 %v1347_v15 }
  0x8e   :  { %v78_v40 = vpop.f32.mrf.mxu0 }
  0x8f   :  { %v126_v13 = vpop.f32.mrf.mxu1  ;;  %v79_v41 = vadd.f32 %v1736_v8, %v78_v40 }
  0x91   :  { %v1495_v14 = vpop.eup %1494 }
  0x92   :  { %151 = vrot.lane.b32.xlu0 %v1495_v14, %s1676_s7 }
  0x93   :  { %v1497_v16 = vpop.eup %1496 }
  0x94   :  { %v132_v17 = vadd.f32 1.0, %v1497_v16 }
  0x96   :  { %1498 = vrcp.f32 %v132_v17  ;;  %v144_v23 = vand.u32 2147483648, %v132_v17  ;;  %vm138_vm2 = vweird.f32 %v132_v17  ;;  %v142_v24 = vand.u32 2147483647, %v132_v17  ;;  %v81_v12 = vpop.f32.mrf.mxu0 }
  0x97   :  { %v82_v13 = vadd.f32 %v1736_v8, %v81_v12 }
  0x98   :  { %v145_v26 = vor.u32 1.1754944e-38, %v144_v23  ;;  %vm143_vm4 = vcmp.eq.f32.partialorder %v142_v24, 8.507059e+37 }
  0x9c   :  { %v1499_v18 = vpop.eup %1498 }
  0x9d   :  { %v134_v19 = vmul.f32 %v1499_v18, %v132_v17  ;;  %vm139_vm1 = vweird.f32 %v1499_v18 }
  0x9e   :  { %vm140_vm3 = vmor %vm138_vm2, %vm139_vm1 }
  0x9f   :  { %v135_v20 = vsub.f32 1.0, %v134_v19 }
  0xa1   :  { %v136_v21 = vmul.f32 %v1499_v18, %v135_v20 }
  0xa3   :  { %v137_v22 = vadd.f32 %v1499_v18, %v136_v21 }
  0xa5   :  { %v141_v25 = vsel %vm140_vm3, %v1499_v18, %v137_v22 }
  0xa6   :  { %v146_v28 = vsel %vm143_vm4, %v145_v26, %v141_v25 }
  0xa7   :  { %v149_v30 = vmul.f32 0.0, %v146_v28 }
 0x104   :  { %v152_v27 = vpop.permute.xlu0 %151 }
 0x105   :  { %v154_v29 = vmul.f32 %v152_v27, %v146_v28 }
 0x107   :  { %156 = vrot.lane.b32.xlu0 %v154_v29, %s1677_s8 }
 0x179   :  { %v157_v31 = vpop.permute.xlu0 %156 }
 0x17a   :  { %v159_v32 = vadd.f32 %v157_v31, %v149_v30 }
 0x17c   :  { %1500 = vtanh.f32 %v159_v32 }
 0x182   :  { %v1501_v33 = vpop.eup %1500 }
 0x183   :  { %162 = vrot.lane.b32.xlu1 %v1501_v33, %s1676_s7 }
 0x1f5   :  { %v163_v36 = vpop.permute.xlu1 %162 }
 0x1f6   :  { %v1748_v37 = vmul.f32 %v163_v36, %v146_v28 }
 0x1f8   :  { %v171_v38 = vpack.c.bf16 %v1748_v37, %v1748_v37 }
 0x1fa   :  { %177 = vrot.lane.b32.xlu1 %v171_v38, %s1677_s8  ;;  %v1471_v38 = vld [vmem:[%s2025_s2 + $0x8] sm:$0xff] }
 0x1fb   :  { %358 = vmatpush.bf16.msrb.mxu1 %v1471_v38 }
 0x26c   :  { %v178_v39 = vpop.permute.xlu1 %177 }
 0x26d   :  { %1356 = vmatmul.msk.bf16.vlgmr.msra.gmra.mxu2 %vm54_vm0, %v178_v39  ;;  %v1470_v39 = vld [vmem:[%s2025_s2] sm:$0xff] }
 0x26e   :  { %359 = vmatpush.bf16.msrb.mxu1 %v1470_v39 }
 0x2f0   :  { %v203_v42 = vpop.f32.mrf.mxu2 }
 0x2f1   :  { %v207_v43 = vadd.f32 %v203_v42, %v79_v41 }
 0x2f3   :  { %1502 = vtanh.f32 %v207_v43  ;;  %v1357_v46 = vmul.f32 -1.442695, %v207_v43 }
 0x2f5   :  { %1504 = vpow2.f32 %v1357_v46 }
 0x2f8   :  { %v205_v44 = vpop.f32.mrf.mxu2 }
 0x2f9   :  { %v1503_v45 = vpop.eup %1502  ;;  %v83_v44 = vpop.f32.mrf.mxu0 }
 0x2fa   :  { %230 = vrot.lane.b32.xlu2 %v1503_v45, %s1676_s7  ;;  %v84_v45 = vadd.f32 %v1736_v8, %v83_v44  ;;  %v1475_v44 = vld [vmem:[%s2025_s2 + $0x8] sm:$0xff] }
 0x2fb   :  { %v1505_v47 = vpop.eup %1504  ;;  %516 = vmatpush.bf16.msrb.mxu3 %v1475_v44 }
 0x2fc   :  { %v211_v48 = vadd.f32 1.0, %v1505_v47 }
 0x2fe   :  { %1506 = vrcp.f32 %v211_v48  ;;  %v223_v54 = vand.u32 2147483648, %v211_v48  ;;  %vm217_vm6 = vweird.f32 %v211_v48  ;;  %v221_v55 = vand.u32 2147483647, %v211_v48 }
 0x300   :  { %v224_v57 = vor.u32 1.1754944e-38, %v223_v54  ;;  %vm222_vm8 = vcmp.eq.f32.partialorder %v221_v55, 8.507059e+37 }
 0x304   :  { %v1507_v49 = vpop.eup %1506 }
 0x305   :  { %v213_v50 = vmul.f32 %v1507_v49, %v211_v48  ;;  %vm218_vm5 = vweird.f32 %v1507_v49 }
 0x306   :  { %vm219_vm7 = vmor %vm217_vm6, %vm218_vm5 }
 0x307   :  { %v214_v51 = vsub.f32 1.0, %v213_v50 }
 0x309   :  { %v215_v52 = vmul.f32 %v1507_v49, %v214_v51 }
 0x30b   :  { %v216_v53 = vadd.f32 %v1507_v49, %v215_v52 }
 0x30d   :  { %v220_v56 = vsel %vm219_vm7, %v1507_v49, %v216_v53 }
 0x30e   :  { %v225_v59 = vsel %vm222_vm8, %v224_v57, %v220_v56 }
 0x30f   :  { %v228_v61 = vmul.f32 %v225_v59, %v159_v32 }
 0x354   :  { %v231_v58 = vpop.permute.xlu2 %230 }
 0x355   :  { %v233_v60 = vmul.f32 %v231_v58, %v225_v59 }
 0x357   :  { %235 = vrot.lane.b32.xlu2 %v233_v60, %s1677_s8 }
 0x3b1   :  { %v236_v62 = vpop.permute.xlu2 %235 }
 0x3b2   :  { %v238_v63 = vadd.f32 %v236_v62, %v228_v61 }
 0x3b4   :  { %1508 = vtanh.f32 %v238_v63 }
 0x3ba   :  { %v1509_v0 = vpop.eup %1508 }
 0x3bb   :  { %241 = vrot.lane.b32.xlu0 %v1509_v0, %s1676_s7 }
 0x42d   :  { %v242_v6 = vpop.permute.xlu0 %241 }
 0x42e   :  { %v1771_v9 = vmul.f32 %v242_v6, %v225_v59  ;;  %v26_v6 = vld [vmem:[%s2023_s0 + $0x20] sm:$0xff] }
 0x430   :  { %v250_v10 = vpack.c.bf16 %v1771_v9, %v1771_v9 }
 0x432   :  { %256 = vrot.lane.b32.xlu1 %v250_v10, %s1677_s8  ;;  %v27_v10 = vld [vmem:[%s2023_s0 + $0x28] sm:$0xff] }
 0x433   :  { %v32_v12 = vpack.c.bf16 %v27_v10, %v26_v6  ;;  %v1481_v10 = vld [vmem:[%s2024_s1 + $0x18] sm:$0xff] }
 0x435   :  { %1337 = vmatmul.msk.bf16.gmra.mxu0 %vm54_vm0, %v32_v12 }
 0x4a4   :  { %v257_v11 = vpop.permute.xlu1 %256 }
 0x4a5   :  { %1366 = vmatmul.msk.bf16.vlgmr.msra.gmra.mxu3 %vm54_vm0, %v257_v11  ;;  %v1472_v11 = vld [vmem:[%s2025_s2] sm:$0xff] }
 0x4a6   :  { %438 = vmatpush.bf16.msrb.mxu2 %v1472_v11  ;;  %v1480_v11 = vld [vmem:[%s2024_s1 + $0x10] sm:$0xff]  ;;  %s1681_s1 = smov 8  }
 0x528   :  { %v282_v14 = vpop.f32.mrf.mxu3 }
 0x529   :  { %v286_v15 = vadd.f32 %v282_v14, %v82_v13 }
 0x52b   :  { %1510 = vtanh.f32 %v286_v15  ;;  %v1367_v18 = vmul.f32 -1.442695, %v286_v15 }
 0x52d   :  { %1512 = vpow2.f32 %v1367_v18 }
 0x530   :  { %v284_v16 = vpop.f32.mrf.mxu3 }
 0x531   :  { %v1511_v17 = vpop.eup %1510 }
 0x532   :  { %309 = vrot.lane.b32.xlu2 %v1511_v17, %s1676_s7  ;;  %v86_v17 = vpop.f32.mrf.mxu0 }
 0x533   :  { %v1513_v19 = vpop.eup %1512  ;;  %v87_v18 = vadd.f32 %v1736_v8, %v86_v17 }
 0x534   :  { %v290_v20 = vadd.f32 1.0, %v1513_v19 }
 0x536   :  { %1514 = vrcp.f32 %v290_v20  ;;  %v302_v26 = vand.u32 2147483648, %v290_v20  ;;  %vm296_vm10 = vweird.f32 %v290_v20  ;;  %v300_v27 = vand.u32 2147483647, %v290_v20 }
 0x538   :  { %v303_v29 = vor.u32 1.1754944e-38, %v302_v26  ;;  %vm301_vm12 = vcmp.eq.f32.partialorder %v300_v27, 8.507059e+37 }
 0x53c   :  { %v1515_v21 = vpop.eup %1514 }
 0x53d   :  { %v292_v22 = vmul.f32 %v1515_v21, %v290_v20  ;;  %vm297_vm9 = vweird.f32 %v1515_v21 }
 0x53e   :  { %vm298_vm11 = vmor %vm296_vm10, %vm297_vm9 }
 0x53f   :  { %v293_v23 = vsub.f32 1.0, %v292_v22 }
 0x541   :  { %v294_v24 = vmul.f32 %v1515_v21, %v293_v23 }
 0x543   :  { %v295_v25 = vadd.f32 %v1515_v21, %v294_v24 }
 0x545   :  { %v299_v28 = vsel %vm298_vm11, %v1515_v21, %v295_v25 }
 0x546   :  { %v304_v31 = vsel %vm301_vm12, %v303_v29, %v299_v28 }
 0x547   :  { %v307_v33 = vmul.f32 %v304_v31, %v238_v63 }
 0x58c   :  { %v310_v30 = vpop.permute.xlu2 %309 }
 0x58d   :  { %v312_v32 = vmul.f32 %v310_v30, %v304_v31 }
 0x58f   :  { %314 = vrot.lane.b32.xlu0 %v312_v32, %s1677_s8 }
 0x601   :  { %v315_v34 = vpop.permute.xlu0 %314 }
 0x602   :  { %v317_v35 = vadd.f32 %v315_v34, %v307_v33 }
 0x604   :  { %1516 = vtanh.f32 %v317_v35 }
 0x60a   :  { %v1517_v36 = vpop.eup %1516 }
 0x60b   :  { %320 = vrot.lane.b32.xlu1 %v1517_v36, %s1676_s7 }
 0x67d   :  { %v321_v40 = vpop.permute.xlu1 %320 }
 0x67e   :  { %v1787_v41 = vmul.f32 %v321_v40, %v304_v31 }
 0x680   :  { %v329_v42 = vpack.c.bf16 %v1787_v41, %v1787_v41 }
 0x682   :  { %335 = vrot.lane.b32.xlu2 %v329_v42, %s1677_s8 }
 0x6dc   :  { %v336_v43 = vpop.permute.xlu2 %335 }
 0x6dd   :  { %1376 = vmatmul.msk.bf16.vlgmr.msrb.gmra.mxu1 %vm54_vm0, %v336_v43 }
 0x75a   :  { %v361_v46 = vpop.f32.mrf.mxu1 }
 0x75b   :  { %v365_v47 = vadd.f32 %v361_v46, %v84_v45  ;;  %v1474_v45 = vld [vmem:[%s2025_s2] sm:$0xff] }
 0x75c   :  { %517 = vmatpush.bf16.msrb.mxu3 %v1474_v45 }
 0x75d   :  { %1518 = vtanh.f32 %v365_v47  ;;  %v1377_v50 = vmul.f32 -1.442695, %v365_v47 }
 0x75f   :  { %1520 = vpow2.f32 %v1377_v50  ;;  %v88_v50 = vpop.f32.mrf.mxu0 }
 0x760   :  { %782 = vmatpush.bf16.msra.mxu3 %v1481_v10 }
 0x762   :  { %v363_v48 = vpop.f32.mrf.mxu1 }
 0x763   :  { %v1519_v49 = vpop.eup %1518 }
 0x764   :  { %388 = vrot.lane.b32.xlu0 %v1519_v49, %s1676_s7  ;;  %783 = vmatpush.bf16.msra.mxu3 %v1480_v11 }
 0x765   :  { %v1521_v51 = vpop.eup %1520 }
 0x766   :  { %v369_v52 = vadd.f32 1.0, %v1521_v51  ;;  %v89_v51 = vadd.f32 %v1736_v8, %v88_v50 }
 0x768   :  { %1522 = vrcp.f32 %v369_v52  ;;  %v381_v58 = vand.u32 2147483648, %v369_v52  ;;  %vm375_vm14 = vweird.f32 %v369_v52  ;;  %v379_v59 = vand.u32 2147483647, %v369_v52 }
 0x76a   :  { %v382_v61 = vor.u32 1.1754944e-38, %v381_v58  ;;  %vm380_vm1 = vcmp.eq.f32.partialorder %v379_v59, 8.507059e+37 }
 0x76e   :  { %v1523_v53 = vpop.eup %1522 }
 0x76f   :  { %v371_v54 = vmul.f32 %v1523_v53, %v369_v52  ;;  %vm376_vm13 = vweird.f32 %v1523_v53 }
 0x770   :  { %vm377_vm15 = vmor %vm375_vm14, %vm376_vm13 }
 0x771   :  { %v372_v55 = vsub.f32 1.0, %v371_v54 }
 0x773   :  { %v373_v56 = vmul.f32 %v1523_v53, %v372_v55 }
 0x775   :  { %v374_v57 = vadd.f32 %v1523_v53, %v373_v56 }
 0x777   :  { %v378_v60 = vsel %vm377_vm15, %v1523_v53, %v374_v57 }
 0x778   :  { %v383_v63 = vsel %vm380_vm1, %v382_v61, %v378_v60 }
 0x779   :  { %v386_v1 = vmul.f32 %v383_v63, %v317_v35 }
 0x7d6   :  { %v389_v62 = vpop.permute.xlu0 %388 }
 0x7d7   :  { %v391_v0 = vmul.f32 %v389_v62, %v383_v63 }
 0x7d9   :  { %393 = vrot.lane.b32.xlu1 %v391_v0, %s1677_s8 }
 0x84b   :  { %v394_v2 = vpop.permute.xlu1 %393 }
 0x84c   :  { %v396_v3 = vadd.f32 %v394_v2, %v386_v1 }
 0x84e   :  { %1524 = vtanh.f32 %v396_v3 }
 0x854   :  { %v1525_v4 = vpop.eup %1524 }
 0x855   :  { %399 = vrot.lane.b32.xlu2 %v1525_v4, %s1676_s7 }
 0x8af   :  { %v400_v13 = vpop.permute.xlu2 %399 }
 0x8b0   :  { %v1810_v14 = vmul.f32 %v400_v13, %v383_v63 }
 0x8b2   :  { %v408_v15 = vpack.c.bf16 %v1810_v14, %v1810_v14 }
 0x8b4   :  { %414 = vrot.lane.b32.xlu0 %v408_v15, %s1677_s8 }
 0x926   :  { %v415_v16 = vpop.permute.xlu0 %414 }
 0x927   :  { %1386 = vmatmul.msk.bf16.vlgmr.msrb.gmra.mxu2 %vm54_vm0, %v415_v16 }
 0x9aa   :  { %v440_v19 = vpop.f32.mrf.mxu2 }
 0x9ab   :  { %v444_v20 = vadd.f32 %v440_v19, %v87_v18 }
 0x9ad   :  { %1526 = vtanh.f32 %v444_v20  ;;  %v1387_v23 = vmul.f32 -1.442695, %v444_v20 }
 0x9af   :  { %1528 = vpow2.f32 %v1387_v23  ;;  %v1477_v23 = vld [vmem:[%s2025_s2 + $0x8] sm:$0xff] }
 0x9b0   :  { %595 = vmatpush.bf16.msra.mxu1 %v1477_v23  ;;  %v1479_v23 = vld [vmem:[%s2025_s2 + $0x8] sm:$0xff] }
 0x9b1   :  { %674 = vmatpush.bf16.msra.mxu2 %v1479_v23 }
 0x9b2   :  { %v442_v21 = vpop.f32.mrf.mxu2 }
 0x9b3   :  { %v1527_v22 = vpop.eup %1526 }
 0x9b4   :  { %467 = vrot.lane.b32.xlu1 %v1527_v22, %s1676_s7 }
 0x9b5   :  { %v1529_v24 = vpop.eup %1528 }
 0x9b6   :  { %v448_v25 = vadd.f32 1.0, %v1529_v24  ;;  %v28_v24 = vld [vmem:[%s2023_s0 + $0x30] sm:$0xff] }
 0x9b8   :  { %1530 = vrcp.f32 %v448_v25  ;;  %v460_v31 = vand.u32 2147483648, %v448_v25  ;;  %vm454_vm3 = vweird.f32 %v448_v25  ;;  %v458_v32 = vand.u32 2147483647, %v448_v25 }
 0x9ba   :  { %v461_v34 = vor.u32 1.1754944e-38, %v460_v31  ;;  %vm459_vm5 = vcmp.eq.f32.partialorder %v458_v32, 8.507059e+37 }
 0x9be   :  { %v1531_v26 = vpop.eup %1530 }
 0x9bf   :  { %v450_v27 = vmul.f32 %v1531_v26, %v448_v25  ;;  %vm455_vm2 = vweird.f32 %v1531_v26  ;;  %v29_v25 = vld [vmem:[%s2023_s0 + $0x38] sm:$0xff] }
 0x9c0   :  { %vm456_vm4 = vmor %vm454_vm3, %vm455_vm2 }
 0x9c1   :  { %v451_v28 = vsub.f32 1.0, %v450_v27  ;;  %v33_v27 = vpack.c.bf16 %v29_v25, %v28_v24 }
 0x9c3   :  { %v452_v29 = vmul.f32 %v1531_v26, %v451_v28  ;;  %1338 = vmatmul.msk.bf16.gmra.mxu0 %vm54_vm0, %v33_v27  ;;  %v1873_v28 = vld [vmem:[%s2025_s2 + $0x18] sm:$0xff] }
 0x9c4   :  { %944 = vmatpush.bf16.msrb.mxu0 %v1873_v28 }
 0x9c5   :  { %v453_v30 = vadd.f32 %v1531_v26, %v452_v29  ;;  %v1879_v29 = vld [vmem:[%s2025_s2 + $0x10] sm:$0xff] }
 0x9c7   :  { %v457_v33 = vsel %vm456_vm4, %v1531_v26, %v453_v30  ;;  %v1476_v26 = vld [vmem:[%s2025_s2] sm:$0xff] }
 0x9c8   :  { %v462_v36 = vsel %vm459_vm5, %v461_v34, %v457_v33  ;;  %596 = vmatpush.bf16.msra.mxu1 %v1476_v26  ;;  %945 = vmatpush.bf16.msrb.mxu0 %v1879_v29 }
 0x9c9   :  { %v465_v39 = vmul.f32 %v462_v36, %v396_v3 }
 0x9cc   :  { %828 = vmatpush.bf16.msrb.mxu1 %v1873_v28  ;;  %1118 = vmatpush.bf16.msra.mxu0 %v1873_v28 }
 0x9d0   :  { %829 = vmatpush.bf16.msrb.mxu1 %v1879_v29  ;;  %1119 = vmatpush.bf16.msra.mxu0 %v1879_v29 }
 0xa26   :  { %v468_v35 = vpop.permute.xlu1 %467 }
 0xa27   :  { %v470_v38 = vmul.f32 %v468_v35, %v462_v36 }
 0xa29   :  { %472 = vrot.lane.b32.xlu2 %v470_v38, %s1677_s8  ;;  %v1897_v38 = vld [vmem:[%s2026_s3 + $0x1] ss:$0 sm:$0xff] }
 0xa40   :  { %v91_v31 = vpop.f32.mrf.mxu0 }
 0xa41   :  { %v92_v32 = vadd.f32 %v1736_v8, %v91_v31 }
 0xa83   :  { %v473_v40 = vpop.permute.xlu2 %472 }
 0xa84   :  { %v475_v42 = vadd.f32 %v473_v40, %v465_v39 }
 0xa86   :  { %1532 = vtanh.f32 %v475_v42 }
 0xa8c   :  { %v1533_v43 = vpop.eup %1532 }
 0xa8d   :  { %478 = vrot.lane.b32.xlu0 %v1533_v43, %s1676_s7 }
 0xaff   :  { %v479_v46 = vpop.permute.xlu0 %478 }
 0xb00   :  { %v1826_v47 = vmul.f32 %v479_v46, %v462_v36 }
 0xb02   :  { %v487_v48 = vpack.c.bf16 %v1826_v47, %v1826_v47 }
 0xb04   :  { %493 = vrot.lane.b32.xlu1 %v487_v48, %s1677_s8 }
 0xb76   :  { %v494_v49 = vpop.permute.xlu1 %493 }
 0xb77   :  { %1396 = vmatmul.msk.bf16.vlgmr.msrb.gmra.mxu3 %vm54_vm0, %v494_v49 }
 0xbfa   :  { %v519_v52 = vpop.f32.mrf.mxu3 }
 0xbfb   :  { %v523_v53 = vadd.f32 %v519_v52, %v89_v51 }
 0xbfd   :  { %1534 = vtanh.f32 %v523_v53  ;;  %v1397_v56 = vmul.f32 -1.442695, %v523_v53 }
 0xbff   :  { %1536 = vpow2.f32 %v1397_v56 }
 0xc02   :  { %v521_v54 = vpop.f32.mrf.mxu3 }
 0xc03   :  { %v1535_v55 = vpop.eup %1534 }
 0xc04   :  { %546 = vrot.lane.b32.xlu2 %v1535_v55, %s1676_s7 }
 0xc05   :  { %v1537_v57 = vpop.eup %1536 }
 0xc06   :  { %v527_v58 = vadd.f32 1.0, %v1537_v57 }
 0xc08   :  { %1538 = vrcp.f32 %v527_v58  ;;  %v539_v0 = vand.u32 2147483648, %v527_v58  ;;  %vm533_vm7 = vweird.f32 %v527_v58  ;;  %v537_v1 = vand.u32 2147483647, %v527_v58 }
 0xc0a   :  { %v540_v3 = vor.u32 1.1754944e-38, %v539_v0  ;;  %vm538_vm9 = vcmp.eq.f32.partialorder %v537_v1, 8.507059e+37 }
 0xc0c   :  { %167 = vrot.lane.b32.xlu2 %v1748_v37, %s1677_s8 }
 0xc0e   :  { %v1539_v59 = vpop.eup %1538 }
 0xc0f   :  { %v529_v60 = vmul.f32 %v1539_v59, %v527_v58  ;;  %vm534_vm6 = vweird.f32 %v1539_v59 }
 0xc10   :  { %vm535_vm8 = vmor %vm533_vm7, %vm534_vm6 }
 0xc11   :  { %v530_v61 = vsub.f32 1.0, %v529_v60 }
 0xc13   :  { %v531_v62 = vmul.f32 %v1539_v59, %v530_v61 }
 0xc15   :  { %v532_v63 = vadd.f32 %v1539_v59, %v531_v62 }
 0xc17   :  { %v536_v2 = vsel %vm535_vm8, %v1539_v59, %v532_v63 }
 0xc18   :  { %v541_v37 = vsel %vm538_vm9, %v540_v3, %v536_v2 }
 0xc19   :  { %v544_v12 = vmul.f32 %v541_v37, %v475_v42 }
 0xc5e   :  { %v547_v4 = vpop.permute.xlu2 %546 }
 0xc5f   :  { %v549_v5 = vmul.f32 %v547_v4, %v541_v37 }
 0xc61   :  { %551 = vrot.lane.b32.xlu0 %v549_v5, %s1677_s8 }
 0xc66   :  { %v168_v6 = vpop.permute.xlu2 %167 }
 0xc67   :  { %170 = vst.msk [vmem:[#allocation2] sm:$0xff] %vm54_vm0, %v168_v6 }
 0xc69   :  { %246 = vrot.lane.b32.xlu0 %v1771_v9, %s1677_s8 }
 0xc6e   :  { %v730_v9 = vld [vmem:[#allocation2] sm:$0xff] }
 0xcd3   :  { %v552_v13 = vpop.permute.xlu0 %551 }
 0xcd4   :  { %v1846_v15 = vadd.f32 %v552_v13, %v544_v12 }
 0xcd6   :  { %1540 = vtanh.f32 %v1846_v15 }
 0xcdb   :  { %v247_v16 = vpop.permute.xlu0 %246 }
 0xcdc   :  { %v1541_v17 = vpop.eup %1540  ;;  %249 = vst.msk [vmem:[#allocation2 + $0x8] sm:$0xff] %vm54_vm0, %v247_v16 }
 0xcdd   :  { %557 = vrot.lane.b32.xlu1 %v1541_v17, %s1676_s7 }
 0xce3   :  { %v731_v18 = vld [vmem:[#allocation2 + $0x8] sm:$0xff] }
 0xce4   :  { %v738_v19 = vpack.c.bf16 %v731_v18, %v730_v9 }
 0xce6   :  { %1431 = vmatmul.msk.bf16.vlgmr.msra.gmra.mxu3 %vm54_vm0, %v738_v19 }
 0xd4f   :  { %v558_v20 = vpop.permute.xlu1 %557 }
 0xd50   :  { %v1852_v21 = vmul.f32 %v558_v20, %v541_v37 }
 0xd52   :  { %v566_v22 = vpack.c.bf16 %v1852_v21, %v1852_v21 }
 0xd54   :  { %572 = vrot.lane.b32.xlu1 %v566_v22, %s1677_s8 }
 0xdc6   :  { %v573_v30 = vpop.permute.xlu1 %572 }
 0xdc7   :  { %1406 = vmatmul.msk.bf16.vlgmr.msra.gmra.mxu1 %vm54_vm0, %v573_v30 }
 0xdc8   :  { %1002 = vmatpush.bf16.msra.mxu1 %v1873_v28 }
 0xdcc   :  { %1003 = vmatpush.bf16.msra.mxu1 %v1879_v29 }
 0xdd7   :  { %830 = vmatmul.bf16.vlgmr.msrb.gmra.mxu1 %v1675_v7  ;;  %v785_v7 = vpop.f32.mrf.mxu3 }
 0xdd8   :  { %1176 = vmatpush.bf16.msrb.mxu1 %v1873_v28  ;;  %v786_v39 = vadd.f32 %v1897_v38, %v785_v7 }
 0xddc   :  { %1177 = vmatpush.bf16.msrb.mxu1 %v1879_v29 }
 0xe44   :  { %v598_v33 = vpop.f32.mrf.mxu1 }
 0xe45   :  { %v602_v34 = vadd.f32 %v598_v33, %v92_v32 }
 0xe47   :  { %1542 = vtanh.f32 %v602_v34  ;;  %v1407_v44 = vmul.f32 -1.442695, %v602_v34 }
 0xe4c   :  { %v600_v35 = vpop.f32.mrf.mxu1 }
 0xe4d   :  { %v1543_v36 = vpop.eup %1542 }
 0xe4e   :  { %625 = vrot.lane.b32.xlu2 %v1543_v36, %s1676_s7  ;;  %v787_v36 = vpop.f32.mrf.mxu3 }
 0xe4f   :  { %v788_v7 = vadd.f32 %v1897_v38, %v787_v36 }
 0xe54   :  { %v831_v40 = vpop.f32.mrf.mxu1 }
 0xe55   :  { %v835_v42 = vadd.f32 %v831_v40, %v786_v39 }
 0xe57   :  { %1544 = vtanh.f32 %v835_v42  ;;  %v1447_v54 = vmul.f32 -1.442695, %v835_v42 }
 0xe58   :  { %1546 = vpow2.f32 %v1407_v44 }
 0xe5c   :  { %v833_v43 = vpop.f32.mrf.mxu1 }
 0xe5d   :  { %v1545_v8 = vpop.eup %1544 }
 0xe5e   :  { %858 = vrot.lane.b32.xlu0 %v1545_v8, %s1676_s7  ;;  %v1547_v45 = vpop.eup %1546 }
 0xe5f   :  { %v606_v46 = vadd.f32 1.0, %v1547_v45 }
 0xe61   :  { %1548 = vrcp.f32 %v606_v46  ;;  %v618_v53 = vand.u32 2147483648, %v606_v46  ;;  %vm612_vm11 = vweird.f32 %v606_v46  ;;  %v616_v55 = vand.u32 2147483647, %v606_v46 }
 0xe62   :  { %1550 = vpow2.f32 %v1447_v54 }
 0xe63   :  { %v619_v57 = vor.u32 1.1754944e-38, %v618_v53  ;;  %vm617_vm13 = vcmp.eq.f32.partialorder %v616_v55, 8.507059e+37 }
 0xe67   :  { %v1549_v48 = vpop.eup %1548 }
 0xe68   :  { %v608_v49 = vmul.f32 %v1549_v48, %v606_v46  ;;  %vm613_vm10 = vweird.f32 %v1549_v48  ;;  %v1551_v61 = vpop.eup %1550 }
 0xe69   :  { %vm614_vm12 = vmor %vm612_vm11, %vm613_vm10  ;;  %v839_v62 = vadd.f32 1.0, %v1551_v61 }
 0xe6a   :  { %v609_v50 = vsub.f32 1.0, %v608_v49 }
 0xe6b   :  { %1552 = vrcp.f32 %v839_v62  ;;  %v851_v4 = vand.u32 2147483648, %v839_v62  ;;  %vm845_vm15 = vweird.f32 %v839_v62  ;;  %v849_v37 = vand.u32 2147483647, %v839_v62 }
 0xe6c   :  { %v610_v51 = vmul.f32 %v1549_v48, %v609_v50 }
 0xe6d   :  { %v852_v6 = vor.u32 1.1754944e-38, %v851_v4  ;;  %vm850_vm2 = vcmp.eq.f32.partialorder %v849_v37, 8.507059e+37  ;;  %v1944_v4 = vpop.f32.mrf.mxu0 }
 0xe6e   :  { %v611_v52 = vadd.f32 %v1549_v48, %v610_v51 }
 0xe70   :  { %v615_v56 = vsel %vm614_vm12, %v1549_v48, %v611_v52 }
 0xe71   :  { %v620_v59 = vsel %vm617_vm13, %v619_v57, %v615_v56  ;;  %v1553_v63 = vpop.eup %1552 }
 0xe72   :  { %v841_v0 = vmul.f32 %v1553_v63, %v839_v62  ;;  %vm846_vm14 = vweird.f32 %v1553_v63  ;;  %v623_v13 = vmul.f32 %v620_v59, %v1846_v15  ;;  %v1478_v15 = vld [vmem:[%s2025_s2] sm:$0xff] }
 0xe73   :  { %vm847_vm1 = vmor %vm845_vm15, %vm846_vm14  ;;  %675 = vmatpush.bf16.msra.mxu2 %v1478_v15 }
 0xe74   :  { %v842_v1 = vsub.f32 1.0, %v841_v0 }
 0xe76   :  { %v843_v2 = vmul.f32 %v1553_v63, %v842_v1 }
 0xe77   :  { %886 = vmatpush.bf16.msrb.mxu2 %v1873_v28 }
 0xe78   :  { %v844_v3 = vadd.f32 %v1553_v63, %v843_v2 }
 0xe7a   :  { %v848_v5 = vsel %vm847_vm1, %v1553_v63, %v844_v3 }
 0xe7b   :  { %v853_v11 = vsel %vm850_vm2, %v852_v6, %v848_v5  ;;  %887 = vmatpush.bf16.msrb.mxu2 %v1879_v29 }
 0xe7c   :  { %v856_v18 = vmul.f32 0.0, %v853_v11 }
 0xea8   :  { %v626_v58 = vpop.permute.xlu2 %625 }
 0xea9   :  { %v628_v60 = vmul.f32 %v626_v58, %v620_v59 }
 0xeab   :  { %630 = vrot.lane.b32.xlu1 %v628_v60, %s1677_s8 }
 0xed0   :  { %v859_v10 = vpop.permute.xlu0 %858 }
 0xed1   :  { %v861_v12 = vmul.f32 %v859_v10, %v853_v11 }
 0xed3   :  { %863 = vrot.lane.b32.xlu2 %v861_v12, %s1677_s8 }
 0xf1d   :  { %v631_v16 = vpop.permute.xlu1 %630 }
 0xf1e   :  { %v1904_v17 = vadd.f32 %v631_v16, %v623_v13 }
 0xf20   :  { %1554 = vtanh.f32 %v1904_v17 }
 0xf26   :  { %v1555_v9 = vpop.eup %1554 }
 0xf27   :  { %636 = vrot.lane.b32.xlu0 %v1555_v9, %s1676_s7 }
 0xf2d   :  { %v864_v19 = vpop.permute.xlu2 %863 }
 0xf2e   :  { %v866_v20 = vadd.f32 %v864_v19, %v856_v18 }
 0xf30   :  { %1556 = vtanh.f32 %v866_v20 }
 0xf36   :  { %v1557_v22 = vpop.eup %1556 }
 0xf37   :  { %869 = vrot.lane.b32.xlu1 %v1557_v22, %s1676_s7 }
 0xf99   :  { %v637_v24 = vpop.permute.xlu0 %636 }
 0xf9a   :  { %v1917_v25 = vmul.f32 %v637_v24, %v620_v59 }
 0xf9c   :  { %v645_v26 = vpack.c.bf16 %v1917_v25, %v1917_v25 }
 0xf9e   :  { %651 = vrot.lane.b32.xlu2 %v645_v26, %s1677_s8 }
 0xfa9   :  { %v870_v27 = vpop.permute.xlu1 %869 }
 0xfaa   :  { %v872_v30 = vmul.f32 %v870_v27, %v853_v11 }
 0xfac   :  { %v873_v31 = vpack.c.bf16 %v872_v30, %v872_v30 }
 0xfae   :  { %875 = vrot.lane.b32.xlu0 %v873_v31, %s1677_s8 }
 0xff8   :  { %v652_v32 = vpop.permute.xlu2 %651 }
 0xff9   :  { %1416 = vmatmul.msk.bf16.vlgmr.msra.gmra.mxu2 %vm54_vm0, %v652_v32 }
 0xffa   :  { %1060 = vmatpush.bf16.msra.mxu2 %v1873_v28 }
 0xffe   :  { %1061 = vmatpush.bf16.msra.mxu2 %v1879_v29 }
0x1020   :  { %v876_v33 = vpop.permute.xlu0 %875 }
0x1021   :  { %1448 = vmatmul.msk.bf16.vlgmr.msrb.gmra.mxu2 %vm54_vm0, %v876_v33 }
0x1022   :  { %1234 = vmatpush.bf16.msrb.mxu2 %v1873_v28 }
0x1026   :  { %1235 = vmatpush.bf16.msrb.mxu2 %v1879_v29 }
0x107c   :  { %v1929_v34 = vpop.f32.mrf.mxu2 }
0x1084   :  { %v679_v35 = vpop.f32.mrf.mxu2 }
0x10a4   :  { %v889_v39 = vpop.f32.mrf.mxu2 }
0x10a5   :  { %v893_v40 = vadd.f32 %v889_v39, %v788_v7 }
0x10a7   :  { %1558 = vtanh.f32 %v893_v40  ;;  %v1449_v8 = vmul.f32 -1.442695, %v893_v40 }
0x10a9   :  { %1560 = vpow2.f32 %v1449_v8 }
0x10ac   :  { %v891_v42 = vpop.f32.mrf.mxu2 }
0x10ad   :  { %v1559_v43 = vpop.eup %1558 }
0x10ae   :  { %916 = vrot.lane.b32.xlu1 %v1559_v43, %s1676_s7 }
0x10af   :  { %v1561_v28 = vpop.eup %1560 }
0x10b0   :  { %v897_v29 = vadd.f32 1.0, %v1561_v28 }
0x10b2   :  { %1562 = vrcp.f32 %v897_v29  ;;  %v909_v50 = vand.u32 2147483648, %v897_v29  ;;  %vm903_vm4 = vweird.f32 %v897_v29  ;;  %v907_v51 = vand.u32 2147483647, %v897_v29 }
0x10b4   :  { %v910_v53 = vor.u32 1.1754944e-38, %v909_v50  ;;  %vm908_vm6 = vcmp.eq.f32.partialorder %v907_v51, 8.507059e+37 }
0x10b6   :  { %325 = vrot.lane.b32.xlu1 %v1787_v41, %s1677_s8 }
0x10b8   :  { %v1563_v44 = vpop.eup %1562 }
0x10b9   :  { %v899_v45 = vmul.f32 %v1563_v44, %v897_v29  ;;  %vm904_vm3 = vweird.f32 %v1563_v44 }
0x10ba   :  { %vm905_vm5 = vmor %vm903_vm4, %vm904_vm3 }
0x10bb   :  { %v900_v46 = vsub.f32 1.0, %v899_v45 }
0x10bd   :  { %v901_v48 = vmul.f32 %v1563_v44, %v900_v46 }
0x10bf   :  { %v902_v49 = vadd.f32 %v1563_v44, %v901_v48 }
0x10c1   :  { %v906_v52 = vsel %vm905_vm5, %v1563_v44, %v902_v49 }
0x10c2   :  { %v911_v41 = vsel %vm908_vm6, %v910_v53, %v906_v52 }
0x10c3   :  { %v914_v57 = vmul.f32 %v911_v41, %v866_v20 }
0x1120   :  { %v917_v54 = vpop.permute.xlu1 %916 }
0x1121   :  { %v919_v55 = vmul.f32 %v917_v54, %v911_v41 }
0x1123   :  { %921 = vrot.lane.b32.xlu2 %v919_v55, %s1677_s8 }
0x1128   :  { %v326_v56 = vpop.permute.xlu1 %325 }
0x1129   :  { %328 = vst.msk [vmem:[#allocation2 + $0x10] sm:$0xff] %vm54_vm0, %v326_v56 }
0x112b   :  { %404 = vrot.lane.b32.xlu2 %v1810_v14, %s1677_s8 }
0x1130   :  { %v732_v62 = vld [vmem:[#allocation2 + $0x10] sm:$0xff] }
0x117d   :  { %v922_v58 = vpop.permute.xlu2 %921 }
0x117e   :  { %v924_v59 = vadd.f32 %v922_v58, %v914_v57 }
0x1180   :  { %1564 = vtanh.f32 %v924_v59 }
0x1185   :  { %v405_v60 = vpop.permute.xlu2 %404 }
0x1186   :  { %v1565_v61 = vpop.eup %1564  ;;  %407 = vst.msk [vmem:[#allocation2 + $0x18] sm:$0xff] %vm54_vm0, %v405_v60 }
0x1187   :  { %927 = vrot.lane.b32.xlu0 %v1565_v61, %s1676_s7 }
0x118d   :  { %v733_v63 = vld [vmem:[#allocation2 + $0x18] sm:$0xff] }
0x118e   :  { %v739_v0 = vpack.c.bf16 %v733_v63, %v732_v62 }
0x1190   :  { %1432 = vmatmul.msk.bf16.gmra.mxu3 %vm54_vm0, %v739_v0 }
0x11f9   :  { %v928_v1 = vpop.permute.xlu0 %927 }
0x11fa   :  { %v930_v2 = vmul.f32 %v928_v1, %v911_v41 }
0x11fc   :  { %v931_v3 = vpack.c.bf16 %v930_v2, %v930_v2 }
0x11fe   :  { %933 = vrot.lane.b32.xlu0 %v931_v3, %s1677_s8 }
0x1213   :  { %v790_v37 = vpop.f32.mrf.mxu3 }
0x1214   :  { %v791_v5 = vadd.f32 %v1897_v38, %v790_v37 }
0x121b   :  { %v792_v8 = vpop.f32.mrf.mxu3 }
0x121c   :  { %v793_v28 = vadd.f32 %v1897_v38, %v792_v8 }
0x1270   :  { %v934_v14 = vpop.permute.xlu0 %933 }
0x1271   :  { %1450 = vmatmul.msk.bf16.vlgmr.msrb.gmra.mxu0 %vm54_vm0, %v934_v14 }
0x12ee   :  { %v947_v6 = vpop.f32.mrf.mxu0 }
0x12ef   :  { %v951_v10 = vadd.f32 %v947_v6, %v791_v5 }
0x12f1   :  { %1566 = vtanh.f32 %v951_v10  ;;  %v1451_v13 = vmul.f32 -1.442695, %v951_v10 }
0x12f3   :  { %1568 = vpow2.f32 %v1451_v13 }
0x12f6   :  { %v949_v11 = vpop.f32.mrf.mxu0 }
0x12f7   :  { %v1567_v12 = vpop.eup %1566 }
0x12f8   :  { %974 = vrot.lane.b32.xlu1 %v1567_v12, %s1676_s7 }
0x12f9   :  { %v1569_v16 = vpop.eup %1568 }
0x12fa   :  { %v955_v9 = vadd.f32 1.0, %v1569_v16 }
0x12fc   :  { %1570 = vrcp.f32 %v955_v9  ;;  %v967_v15 = vand.u32 2147483648, %v955_v9  ;;  %vm961_vm8 = vweird.f32 %v955_v9  ;;  %v965_v24 = vand.u32 2147483647, %v955_v9 }
0x12fe   :  { %v968_v27 = vor.u32 1.1754944e-38, %v967_v15  ;;  %vm966_vm10 = vcmp.eq.f32.partialorder %v965_v24, 8.507059e+37 }
0x1302   :  { %v1571_v18 = vpop.eup %1570 }
0x1303   :  { %v957_v19 = vmul.f32 %v1571_v18, %v955_v9  ;;  %vm962_vm7 = vweird.f32 %v1571_v18 }
0x1304   :  { %vm963_vm9 = vmor %vm961_vm8, %vm962_vm7 }
0x1305   :  { %v958_v20 = vsub.f32 1.0, %v957_v19 }
0x1307   :  { %v959_v22 = vmul.f32 %v1571_v18, %v958_v20 }
0x1309   :  { %v960_v23 = vadd.f32 %v1571_v18, %v959_v22 }
0x130b   :  { %v964_v26 = vsel %vm963_vm9, %v1571_v18, %v960_v23 }
0x130c   :  { %v969_v31 = vsel %vm966_vm10, %v968_v27, %v964_v26 }
0x130d   :  { %v972_v33 = vmul.f32 %v969_v31, %v924_v59 }
0x136a   :  { %v975_v30 = vpop.permute.xlu1 %974 }
0x136b   :  { %v977_v32 = vmul.f32 %v975_v30, %v969_v31 }
0x136d   :  { %979 = vrot.lane.b32.xlu2 %v977_v32, %s1677_s8 }
0x13c7   :  { %v980_v35 = vpop.permute.xlu2 %979 }
0x13c8   :  { %v982_v36 = vadd.f32 %v980_v35, %v972_v33  ;;  %v1622_v33 = vld [vmem:[%s2026_s3] ss:$0 sm:$0xff]  ;;  %s1678_s3 = smov 96  }
0x13c9   :  { %v94_v35 = vadd.f32 %v1622_v33, %v1944_v4 }
0x13ca   :  { %1572 = vtanh.f32 %v982_v36 }
0x13d0   :  { %v1573_v7 = vpop.eup %1572 }
0x13d1   :  { %985 = vrot.lane.b32.xlu0 %v1573_v7, %s1676_s7  ;;  %v681_v7 = vadd.f32 %v1929_v34, %v94_v35 }
0x1443   :  { %v986_v39 = vpop.permute.xlu0 %985 }
0x1444   :  { %v988_v40 = vmul.f32 %v986_v39, %v969_v31 }
0x1446   :  { %v989_v42 = vpack.c.bf16 %v988_v40, %v988_v40 }
0x1448   :  { %991 = vrot.lane.b32.xlu1 %v989_v42, %s1677_s8 }
0x14ba   :  { %v992_v43 = vpop.permute.xlu1 %991 }
0x14bb   :  { %1452 = vmatmul.msk.bf16.vlgmr.msra.gmra.mxu1 %vm54_vm0, %v992_v43 }
0x1538   :  { %v1005_v29 = vpop.f32.mrf.mxu1 }
0x1539   :  { %v1009_v44 = vadd.f32 %v1005_v29, %v793_v28 }
0x153b   :  { %1574 = vtanh.f32 %v1009_v44  ;;  %v1453_v48 = vmul.f32 -1.442695, %v1009_v44  ;;  %v1417_v44 = vmul.f32 -1.442695, %v681_v7 }
0x153d   :  { %1576 = vpow2.f32 %v1453_v48 }
0x1540   :  { %v1007_v45 = vpop.f32.mrf.mxu1 }
0x1541   :  { %v1575_v46 = vpop.eup %1574 }
0x1542   :  { %1032 = vrot.lane.b32.xlu2 %v1575_v46, %s1676_s7 }
0x1543   :  { %v1577_v49 = vpop.eup %1576 }
0x1544   :  { %v1013_v50 = vadd.f32 1.0, %v1577_v49 }
0x1546   :  { %1578 = vrcp.f32 %v1013_v50  ;;  %v1025_v55 = vand.u32 2147483648, %v1013_v50  ;;  %vm1019_vm12 = vweird.f32 %v1013_v50  ;;  %v1023_v56 = vand.u32 2147483647, %v1013_v50 }
0x1548   :  { %v1026_v58 = vor.u32 1.1754944e-38, %v1025_v55  ;;  %vm1024_vm14 = vcmp.eq.f32.partialorder %v1023_v56, 8.507059e+37 }
0x154a   :  { %483 = vrot.lane.b32.xlu2 %v1826_v47, %s1677_s8 }
0x154c   :  { %v1579_v51 = vpop.eup %1578 }
0x154d   :  { %v1015_v52 = vmul.f32 %v1579_v51, %v1013_v50  ;;  %vm1020_vm11 = vweird.f32 %v1579_v51 }
0x154e   :  { %vm1021_vm13 = vmor %vm1019_vm12, %vm1020_vm11 }
0x154f   :  { %v1016_v53 = vsub.f32 1.0, %v1015_v52 }
0x1551   :  { %v1017_v54 = vmul.f32 %v1579_v51, %v1016_v53 }
0x1553   :  { %v1018_v41 = vadd.f32 %v1579_v51, %v1017_v54 }
0x1555   :  { %v1022_v57 = vsel %vm1021_vm13, %v1579_v51, %v1018_v41 }
0x1556   :  { %v1027_v47 = vsel %vm1024_vm14, %v1026_v58, %v1022_v57 }
0x1557   :  { %v1030_v62 = vmul.f32 %v1027_v47, %v982_v36 }
0x159c   :  { %v1033_v59 = vpop.permute.xlu2 %1032 }
0x159d   :  { %v1035_v60 = vmul.f32 %v1033_v59, %v1027_v47 }
0x159f   :  { %1037 = vrot.lane.b32.xlu0 %v1035_v60, %s1677_s8 }
0x15a4   :  { %v484_v61 = vpop.permute.xlu2 %483 }
0x15a5   :  { %486 = vst.msk [vmem:[#allocation2 + $0x20] sm:$0xff] %vm54_vm0, %v484_v61 }
0x15a7   :  { %562 = vrot.lane.b32.xlu0 %v1852_v21, %s1677_s8 }
0x15ac   :  { %v734_v3 = vld [vmem:[#allocation2 + $0x20] sm:$0xff] }
0x1611   :  { %v1038_v63 = vpop.permute.xlu0 %1037 }
0x1612   :  { %v1040_v0 = vadd.f32 %v1038_v63, %v1030_v62 }
0x1614   :  { %1580 = vtanh.f32 %v1040_v0 }
0x1619   :  { %v563_v1 = vpop.permute.xlu0 %562 }
0x161a   :  { %v1581_v2 = vpop.eup %1580  ;;  %565 = vst.msk [vmem:[#allocation2 + $0x28] sm:$0xff] %vm54_vm0, %v563_v1 }
0x161b   :  { %1043 = vrot.lane.b32.xlu1 %v1581_v2, %s1676_s7 }
0x1621   :  { %v735_v14 = vld [vmem:[#allocation2 + $0x28] sm:$0xff] }
0x1622   :  { %v740_v37 = vpack.c.bf16 %v735_v14, %v734_v3 }
0x1624   :  { %1433 = vmatmul.msk.bf16.gmra.mxu3 %vm54_vm0, %v740_v37 }
0x168d   :  { %v1044_v5 = vpop.permute.xlu1 %1043 }
0x168e   :  { %v1046_v6 = vmul.f32 %v1044_v5, %v1027_v47 }
0x1690   :  { %v1047_v10 = vpack.c.bf16 %v1046_v6, %v1046_v6 }
0x1692   :  { %1049 = vrot.lane.b32.xlu1 %v1047_v10, %s1677_s8 }
0x16a7   :  { %v795_v11 = vpop.f32.mrf.mxu3 }
0x16a8   :  { %v796_v12 = vadd.f32 %v1897_v38, %v795_v11 }
0x16af   :  { %v797_v61 = vpop.f32.mrf.mxu3 }
0x16b0   :  { %v798_v62 = vadd.f32 %v1897_v38, %v797_v61 }
0x1704   :  { %v1050_v21 = vpop.permute.xlu1 %1049 }
0x1705   :  { %1454 = vmatmul.msk.bf16.vlgmr.msra.gmra.mxu2 %vm54_vm0, %v1050_v21 }
0x1788   :  { %v1063_v13 = vpop.f32.mrf.mxu2 }
0x1789   :  { %v1067_v16 = vadd.f32 %v1063_v13, %v796_v12 }
0x178b   :  { %1582 = vtanh.f32 %v1067_v16  ;;  %v1455_v19 = vmul.f32 -1.442695, %v1067_v16 }
0x178d   :  { %1584 = vpow2.f32 %v1455_v19 }
0x1790   :  { %v1065_v9 = vpop.f32.mrf.mxu2 }
0x1791   :  { %v1583_v18 = vpop.eup %1582 }
0x1792   :  { %1090 = vrot.lane.b32.xlu2 %v1583_v18, %s1676_s7 }
0x1793   :  { %v1585_v20 = vpop.eup %1584 }
0x1794   :  { %v1071_v22 = vadd.f32 1.0, %v1585_v20 }
0x1796   :  { %1586 = vrcp.f32 %v1071_v22  ;;  %v1083_v30 = vand.u32 2147483648, %v1071_v22  ;;  %vm1077_vm1 = vweird.f32 %v1071_v22  ;;  %v1081_v31 = vand.u32 2147483647, %v1071_v22 }
0x1797   :  { %1588 = vtanh.f32 %v681_v7 }
0x1798   :  { %v1084_v36 = vor.u32 1.1754944e-38, %v1083_v30  ;;  %vm1082_vm3 = vcmp.eq.f32.partialorder %v1081_v31, 8.507059e+37 }
0x179c   :  { %v1587_v23 = vpop.eup %1586 }
0x179d   :  { %v1073_v15 = vmul.f32 %v1587_v23, %v1071_v22  ;;  %vm1078_vm15 = vweird.f32 %v1587_v23  ;;  %v1589_v43 = vpop.eup %1588 }
0x179e   :  { %vm1079_vm2 = vmor %vm1077_vm1, %vm1078_vm15 }
0x179f   :  { %v1074_v24 = vsub.f32 1.0, %v1073_v15 }
0x17a1   :  { %v1075_v26 = vmul.f32 %v1587_v23, %v1074_v24 }
0x17a3   :  { %v1076_v27 = vadd.f32 %v1587_v23, %v1075_v26 }
0x17a5   :  { %v1080_v32 = vsel %vm1079_vm2, %v1587_v23, %v1076_v27 }
0x17a6   :  { %v1085_v40 = vsel %vm1082_vm3, %v1084_v36, %v1080_v32 }
0x17a7   :  { %v1088_v8 = vmul.f32 %v1085_v40, %v1040_v0 }
0x17ec   :  { %v1091_v39 = vpop.permute.xlu2 %1090 }
0x17ed   :  { %v1093_v42 = vmul.f32 %v1091_v39, %v1085_v40 }
0x17ef   :  { %1095 = vrot.lane.b32.xlu0 %v1093_v42, %s1677_s8 }
0x17f7   :  { %704 = vrot.lane.b32.xlu0 %v1589_v43, %s1676_s7 }
0x1861   :  { %v1096_v28 = vpop.permute.xlu0 %1095 }
0x1862   :  { %v1974_v29 = vadd.f32 %v1096_v28, %v1088_v8 }
0x1864   :  { %1590 = vtanh.f32 %v1974_v29 }
0x1865   :  { %1592 = vpow2.f32 %v1417_v44 }
0x1869   :  { %v705_v58 = vpop.permute.xlu0 %704 }
0x186a   :  { %v1591_v4 = vpop.eup %1590 }
0x186b   :  { %1101 = vrot.lane.b32.xlu1 %v1591_v4, %s1676_s7  ;;  %v1593_v34 = vpop.eup %1592 }
0x186c   :  { %v685_v45 = vadd.f32 1.0, %v1593_v34 }
0x186e   :  { %1594 = vrcp.f32 %v685_v45  ;;  %v697_v41 = vand.u32 2147483648, %v685_v45  ;;  %vm691_vm5 = vweird.f32 %v685_v45  ;;  %v695_v55 = vand.u32 2147483647, %v685_v45 }
0x1870   :  { %v698_v57 = vor.u32 1.1754944e-38, %v697_v41  ;;  %vm696_vm7 = vcmp.eq.f32.partialorder %v695_v55, 8.507059e+37 }
0x1874   :  { %v1595_v46 = vpop.eup %1594 }
0x1875   :  { %v687_v48 = vmul.f32 %v1595_v46, %v685_v45  ;;  %vm692_vm4 = vweird.f32 %v1595_v46 }
0x1876   :  { %vm693_vm6 = vmor %vm691_vm5, %vm692_vm4 }
0x1877   :  { %v688_v49 = vsub.f32 1.0, %v687_v48 }
0x1879   :  { %v689_v50 = vmul.f32 %v1595_v46, %v688_v49 }
0x187b   :  { %v690_v53 = vadd.f32 %v1595_v46, %v689_v50 }
0x187d   :  { %v694_v56 = vsel %vm693_vm6, %v1595_v46, %v690_v53 }
0x187e   :  { %v699_v59 = vsel %vm696_vm7, %v698_v57, %v694_v56 }
0x187f   :  { %v707_v47 = vmul.f32 %v705_v58, %v699_v59  ;;  %v702_v2 = vmul.f32 %v699_v59, %v1904_v17 }
0x18dd   :  { %v1102_v51 = vpop.permute.xlu1 %1101 }
0x18de   :  { %v1104_v52 = vmul.f32 %v1102_v51, %v1085_v40 }
0x18e0   :  { %v1105_v54 = vpack.c.bf16 %v1104_v52, %v1104_v52 }
0x18e2   :  { %1107 = vrot.lane.b32.xlu2 %v1105_v54, %s1677_s8 }
0x18ea   :  { %709 = vrot.lane.b32.xlu2 %v707_v47, %s1677_s8 }
0x193c   :  { %v1108_v60 = vpop.permute.xlu2 %1107 }
0x193d   :  { %1456 = vmatmul.msk.bf16.vlgmr.msra.gmra.mxu0 %vm54_vm0, %v1108_v60 }
0x1944   :  { %v710_v1 = vpop.permute.xlu2 %709 }
0x1945   :  { %v1983_v3 = vadd.f32 %v710_v1, %v702_v2 }
0x19ba   :  { %v1121_v63 = vpop.f32.mrf.mxu0 }
0x19bb   :  { %v1125_v0 = vadd.f32 %v1121_v63, %v798_v62 }
0x19bd   :  { %1596 = vtanh.f32 %v1125_v0  ;;  %v1457_v6 = vmul.f32 -1.442695, %v1125_v0 }
0x19be   :  { %1598 = vtanh.f32 %v1983_v3 }
0x19bf   :  { %1600 = vpow2.f32 %v1457_v6 }
0x19c2   :  { %v1123_v14 = vpop.f32.mrf.mxu0 }
0x19c3   :  { %v1597_v37 = vpop.eup %1596 }
0x19c4   :  { %1148 = vrot.lane.b32.xlu1 %v1597_v37, %s1676_s7  ;;  %v1599_v5 = vpop.eup %1598 }
0x19c5   :  { %v1601_v10 = vpop.eup %1600 }
0x19c6   :  { %v1129_v21 = vadd.f32 1.0, %v1601_v10 }
0x19c8   :  { %1602 = vrcp.f32 %v1129_v21  ;;  %v1141_v9 = vand.u32 2147483648, %v1129_v21  ;;  %vm1135_vm9 = vweird.f32 %v1129_v21  ;;  %v1139_v18 = vand.u32 2147483647, %v1129_v21 }
0x19ca   :  { %v1142_v20 = vor.u32 1.1754944e-38, %v1141_v9  ;;  %vm1140_vm11 = vcmp.eq.f32.partialorder %v1139_v18, 8.507059e+37 }
0x19cc   :  { %715 = vrot.lane.b32.xlu1 %v1599_v5, %s1676_s7 }
0x19ce   :  { %v1603_v11 = vpop.eup %1602 }
0x19cf   :  { %v1131_v12 = vmul.f32 %v1603_v11, %v1129_v21  ;;  %vm1136_vm8 = vweird.f32 %v1603_v11 }
0x19d0   :  { %vm1137_vm10 = vmor %vm1135_vm9, %vm1136_vm8 }
0x19d1   :  { %v1132_v13 = vsub.f32 1.0, %v1131_v12 }
0x19d3   :  { %v1133_v17 = vmul.f32 %v1603_v11, %v1132_v13 }
0x19d5   :  { %v1134_v16 = vadd.f32 %v1603_v11, %v1133_v17 }
0x19d7   :  { %v1138_v19 = vsel %vm1137_vm10, %v1603_v11, %v1134_v16 }
0x19d8   :  { %v1143_v23 = vsel %vm1140_vm11, %v1142_v20, %v1138_v19 }
0x19d9   :  { %v1146_v27 = vmul.f32 %v1143_v23, %v1974_v29 }
0x1a36   :  { %v1149_v22 = vpop.permute.xlu1 %1148 }
0x1a37   :  { %v1151_v15 = vmul.f32 %v1149_v22, %v1143_v23 }
0x1a39   :  { %1153 = vrot.lane.b32.xlu0 %v1151_v15, %s1677_s8 }
0x1a3e   :  { %v716_v24 = vpop.permute.xlu1 %715 }
0x1a3f   :  { %v718_v26 = vmul.f32 %v716_v24, %v699_v59 }
0x1a41   :  { %641 = vrot.lane.b32.xlu0 %v1917_v25, %s1677_s8  ;;  %720 = vrot.lane.b32.xlu1 %v718_v26, %s1677_s8 }
0x1aab   :  { %v1154_v30 = vpop.permute.xlu0 %1153 }
0x1aac   :  { %v1156_v31 = vadd.f32 %v1154_v30, %v1146_v27 }
0x1aae   :  { %1604 = vtanh.f32 %v1156_v31 }
0x1ab3   :  { %v642_v32 = vpop.permute.xlu0 %641  ;;  %v721_v33 = vpop.permute.xlu1 %720 }
0x1ab4   :  { %v1605_v35 = vpop.eup %1604  ;;  %644 = vst.msk [vmem:[#allocation2 + $0x30] sm:$0xff] %vm54_vm0, %v642_v32 }
0x1ab5   :  { %723 = vst.msk [vmem:[#allocation2 + $0x38] sm:$0xff] %vm54_vm0, %v721_v33  ;;  %1159 = vrot.lane.b32.xlu2 %v1605_v35, %s1676_s7 }
0x1ab6   :  { %724 = vst.msk [vmem:[#allocation3] sm:$0xff] %vm54_vm0, %v721_v33 }
0x1abb   :  { %v736_v36 = vld [vmem:[#allocation2 + $0x30] sm:$0xff] }
0x1abc   :  { %v737_v25 = vld [vmem:[#allocation2 + $0x38] sm:$0xff] }
0x1abd   :  { %v741_v7 = vpack.c.bf16 %v737_v25, %v736_v36 }
0x1abf   :  { %1434 = vmatmul.msk.bf16.gmra.mxu3 %vm54_vm0, %v741_v7 }
0x1b0f   :  { %v1160_v39 = vpop.permute.xlu2 %1159 }
0x1b10   :  { %v1162_v40 = vmul.f32 %v1160_v39, %v1143_v23 }
0x1b12   :  { %v1163_v42 = vpack.c.bf16 %v1162_v40, %v1162_v40 }
0x1b14   :  { %1165 = vrot.lane.b32.xlu2 %v1163_v42, %s1677_s8 }
0x1b42   :  { %v800_v8 = vpop.f32.mrf.mxu3 }
0x1b43   :  { %v801_v28 = vadd.f32 %v1897_v38, %v800_v8 }
0x1b4a   :  { %v802_v14 = vpop.f32.mrf.mxu3 }
0x1b4b   :  { %v803_v37 = vadd.f32 %v1897_v38, %v802_v14 }
0x1b6e   :  { %v1166_v43 = vpop.permute.xlu2 %1165 }
0x1b6f   :  { %1458 = vmatmul.msk.bf16.vlgmr.msrb.gmra.mxu1 %vm54_vm0, %v1166_v43 }
0x1bec   :  { %v1179_v29 = vpop.f32.mrf.mxu1 }
0x1bed   :  { %v1183_v4 = vadd.f32 %v1179_v29, %v801_v28 }
0x1bef   :  { %1606 = vtanh.f32 %v1183_v4  ;;  %v1459_v45 = vmul.f32 -1.442695, %v1183_v4 }
0x1bf1   :  { %1608 = vpow2.f32 %v1459_v45 }
0x1bf4   :  { %v1181_v44 = vpop.f32.mrf.mxu1 }
0x1bf5   :  { %v1607_v34 = vpop.eup %1606 }
0x1bf6   :  { %1206 = vrot.lane.b32.xlu0 %v1607_v34, %s1676_s7 }
0x1bf7   :  { %v1609_v46 = vpop.eup %1608 }
0x1bf8   :  { %v1187_v48 = vadd.f32 1.0, %v1609_v46 }
0x1bfa   :  { %1610 = vrcp.f32 %v1187_v48  ;;  %v1199_v54 = vand.u32 2147483648, %v1187_v48  ;;  %vm1193_vm13 = vweird.f32 %v1187_v48  ;;  %v1197_v41 = vand.u32 2147483647, %v1187_v48 }
0x1bfc   :  { %v1200_v56 = vor.u32 1.1754944e-38, %v1199_v54  ;;  %vm1198_vm15 = vcmp.eq.f32.partialorder %v1197_v41, 8.507059e+37 }
0x1c00   :  { %v1611_v49 = vpop.eup %1610 }
0x1c01   :  { %v1189_v50 = vmul.f32 %v1611_v49, %v1187_v48  ;;  %vm1194_vm12 = vweird.f32 %v1611_v49 }
0x1c02   :  { %vm1195_vm14 = vmor %vm1193_vm13, %vm1194_vm12 }
0x1c03   :  { %v1190_v51 = vsub.f32 1.0, %v1189_v50 }
0x1c05   :  { %v1191_v52 = vmul.f32 %v1611_v49, %v1190_v51 }
0x1c07   :  { %v1192_v53 = vadd.f32 %v1611_v49, %v1191_v52 }
0x1c09   :  { %v1196_v55 = vsel %vm1195_vm14, %v1611_v49, %v1192_v53 }
0x1c0a   :  { %v1201_v58 = vsel %vm1198_vm15, %v1200_v56, %v1196_v55 }
0x1c0b   :  { %v1204_v47 = vmul.f32 %v1201_v58, %v1156_v31 }
0x1c68   :  { %v1207_v57 = vpop.permute.xlu0 %1206 }
0x1c69   :  { %v1209_v59 = vmul.f32 %v1207_v57, %v1201_v58 }
0x1c6b   :  { %1211 = vrot.lane.b32.xlu1 %v1209_v59, %s1677_s8 }
0x1cdd   :  { %v1212_v60 = vpop.permute.xlu1 %1211 }
0x1cde   :  { %v1214_v61 = vadd.f32 %v1212_v60, %v1204_v47 }
0x1ce0   :  { %1612 = vtanh.f32 %v1214_v61 }
0x1ce6   :  { %v1613_v62 = vpop.eup %1612 }
0x1ce7   :  { %1217 = vrot.lane.b32.xlu2 %v1613_v62, %s1676_s7 }
0x1d41   :  { %v1218_v63 = vpop.permute.xlu2 %1217 }
0x1d42   :  { %v1220_v0 = vmul.f32 %v1218_v63, %v1201_v58 }
0x1d44   :  { %v1221_v1 = vpack.c.bf16 %v1220_v0, %v1220_v0 }
0x1d46   :  { %1223 = vrot.lane.b32.xlu0 %v1221_v1, %s1677_s8 }
0x1db8   :  { %v1224_v2 = vpop.permute.xlu0 %1223 }
0x1db9   :  { %1460 = vmatmul.msk.bf16.vlgmr.msrb.gmra.mxu2 %vm54_vm0, %v1224_v2 }
0x1e3c   :  { %v1237_v5 = vpop.f32.mrf.mxu2 }
0x1e3d   :  { %v1241_v6 = vadd.f32 %v1237_v5, %v803_v37 }
0x1e3f   :  { %1614 = vtanh.f32 %v1241_v6  ;;  %v1461_v11 = vmul.f32 -1.442695, %v1241_v6 }
0x1e41   :  { %1616 = vpow2.f32 %v1461_v11 }
0x1e44   :  { %v1239_v10 = vpop.f32.mrf.mxu2 }
0x1e45   :  { %v1615_v21 = vpop.eup %1614 }
0x1e46   :  { %1264 = vrot.lane.b32.xlu1 %v1615_v21, %s1676_s7 }
0x1e47   :  { %v1617_v12 = vpop.eup %1616 }
0x1e48   :  { %v1245_v13 = vadd.f32 1.0, %v1617_v12 }
0x1e4a   :  { %1618 = vrcp.f32 %v1245_v13  ;;  %v1257_v19 = vand.u32 2147483648, %v1245_v13  ;;  %vm1251_vm2 = vweird.f32 %v1245_v13  ;;  %v1255_v20 = vand.u32 2147483647, %v1245_v13 }
0x1e4c   :  { %v1258_v23 = vor.u32 1.1754944e-38, %v1257_v19  ;;  %vm1256_vm4 = vcmp.eq.f32.partialorder %v1255_v20, 8.507059e+37 }
0x1e4e   :  { %726 = vrot.lane.b32.xlu1 %v1983_v3, %s1678_s3 }
0x1e50   :  { %v1619_v17 = vpop.eup %1618 }
0x1e51   :  { %v1247_v16 = vmul.f32 %v1619_v17, %v1245_v13  ;;  %vm1252_vm1 = vweird.f32 %v1619_v17 }
0x1e52   :  { %vm1253_vm3 = vmor %vm1251_vm2, %vm1252_vm1 }
0x1e53   :  { %v1248_v9 = vsub.f32 1.0, %v1247_v16 }
0x1e55   :  { %v1249_v38 = vmul.f32 %v1619_v17, %v1248_v9 }
0x1e57   :  { %v1250_v18 = vadd.f32 %v1619_v17, %v1249_v38 }
0x1e59   :  { %v1254_v22 = vsel %vm1253_vm3, %v1619_v17, %v1250_v18 }
0x1e5a   :  { %v1259_v3 = vsel %vm1256_vm4, %v1258_v23, %v1254_v22 }
0x1e5b   :  { %v1262_v27 = vmul.f32 %v1259_v3, %v1214_v61 }
0x1eb8   :  { %v1265_v15 = vpop.permute.xlu1 %1264 }
0x1eb9   :  { %v1267_v24 = vmul.f32 %v1265_v15, %v1259_v3 }
0x1ebb   :  { %1269 = vrot.lane.b32.xlu2 %v1267_v24, %s1677_s8 }
0x1ec0   :  { %v727_v26 = vpop.permute.xlu1 %726 }
0x1ec1   :  { %729 = vst.msk [vmem:[#allocation5] sm:$0xff] %vm54_vm0, %v727_v26 }
0x1f15   :  { %v1270_v30 = vpop.permute.xlu2 %1269 }
0x1f16   :  { %v1272_v31 = vadd.f32 %v1270_v30, %v1262_v27 }
0x1f18   :  { %1620 = vtanh.f32 %v1272_v31 }
0x1f1e   :  { %v1621_v32 = vpop.eup %1620 }
0x1f1f   :  { %1275 = vrot.lane.b32.xlu0 %v1621_v32, %s1676_s7  ;;  %s1682_s7 = smov [#allocation3]  }
0x1f20   :  { %s1295_s18 = sshll.u32 %s1682_s7, 4  ;;  %s1296_s18 = int_to_ptr.vmem [resolvable:$true] %s1295_s18 }
0x1f27   :  { %1286 = vrot.lane.b32.xlu0 %v1272_v31, %s1678_s3 }
0x1f91   :  { %v1276_v33 = vpop.permute.xlu0 %1275 }
0x1f92   :  { %v1278_v35 = vmul.f32 %v1276_v33, %v1259_v3 }
0x1f94   :  { %1280 = vrot.lane.b32.xlu2 %v1278_v35, %s1677_s8  ;;  %s1297_s8 = sshll.u32 %s2027_s4, 4  ;;  %s1298_s8 = int_to_ptr.hbm [resolvable:$true] %s1297_s8 }
0x1f99   :  { %v1287_v36 = vpop.permute.xlu0 %1286 }
0x1f9a   :  { %1290 = vst.msk [vmem:[#allocation5 + $0x8] sm:$0xff] %vm54_vm0, %v1287_v36 }
0x1f9b   :  { %1316 = dma.vmem_to_hbm [thread:$0]  %s1309_s13, 256, %s1311_s16, [#allocation6], %s1680_s17, %s1680_s17, %s1681_s1  }
0x1fee   :  { %v1281_v25 = vpop.permute.xlu2 %1280 }
0x1fef   :  { %1284 = vst.msk [vmem:[#allocation3 + $0x8] sm:$0xff] %vm54_vm0, %v1281_v25 }
0x1ff0   :  { %1303 = dma.vmem_to_hbm [thread:$0]  %s1296_s18, 256, %s1298_s8, [#allocation4], %s1680_s17, %s1680_s17, %s1681_s1  }
0x1ff1   :  { %1671 = dma.done.wait [#allocation4], 256  }
0x1ff2   :  { %1672 = vsyncadd [#allocation4], 4294967040 }
0x1ff3   :  { %1673 = dma.done.wait [#allocation6], 256  }
0x1ff4   :  { %1674 = vsyncadd [#allocation6], 4294967040 }
0x1ff5   :  { %1325 = vsyncpa [#allocation4], 1 }
0x1ff6   :  { %1326 = vsyncpa [#allocation6], 1 }

</bundles_post_ra>
